<compile_context>
chip_gen: v5e
topology: v5e:2x2
jax: 0.10.0
libtpu: 0.0.40
codegen_flags: <defaults>
</compile_context>

<pallas_src>
import numpy as np
import jax
import jax.numpy as jnp
from jax.experimental import pallas as pl
from jax.experimental.pallas import tpu as pltpu

D_MODEL = 32
N_HEAD = 4
D_PER_HEAD = D_MODEL // N_HEAD
SPATIAL_DIM = 5
LN_EPS = 1e-5
MAX_BLOCK_B = 64   # batch elements per grid step; sized for the (8,128)-padded tiles
                   # of the (L,T)=(8,8) trailing dims to stay well inside scoped VMEM
                   # on v5e (16 MiB default) / v7x (64 MiB physical).


def mhas_kernel(q_ref, k_ref, v_ref, locs_ref, mask_ref,
                wq_ref, bq_ref, wk_ref, bk_ref, wv_ref, bv_ref,
                wloc_ref, bloc_ref, wfc_ref, bfc_ref, gamma_ref, beta_ref,
                out_ref, attn_ref):
    BB, L, D = q_ref.shape
    T = k_ref.shape[1]
    S = locs_ref.shape[1]
    H, dph = N_HEAD, D_PER_HEAD

    x_q = q_ref[...].reshape(BB * L, D)           # residual + projection input
    x_k = k_ref[...].reshape(BB * T, D)
    x_v = v_ref[...].reshape(BB * T, D)

    # Folded QKV projections: one big-M MXU matmul per projection.
    Q = jnp.dot(x_q, wq_ref[...], preferred_element_type=jnp.float32) + bq_ref[...]
    K = jnp.dot(x_k, wk_ref[...], preferred_element_type=jnp.float32) + bk_ref[...]
    V = jnp.dot(x_v, wv_ref[...], preferred_element_type=jnp.float32) + bv_ref[...]
    Q3 = Q.reshape(BB, L, D)
    K3 = K.reshape(BB, T, D)
    V3 = V.reshape(BB, T, D)

    scale = jnp.float32(1.0 / np.sqrt(dph))

    # Per-head scores, each batched over the full BB block (contraction on last axes,
    # no explicit transposes); static head unroll (H = 4).
    score_list = []
    for h in range(H):
        lo = h * dph
        score_list.append(jnp.einsum(
            'bld,btd->blt', Q3[:, :, lo:lo + dph], K3[:, :, lo:lo + dph],
            preferred_element_type=jnp.float32))
    scores = jnp.stack(score_list, axis=0) * scale            # (H, BB, L, T)

    # Spatial Linear(S -> H) + ReLU ('mul' fusion), on full (BB, L, T) planes.
    # wloc / bloc live in SMEM so per-(s, h) weights are scalar-unit reads.
    locs = locs_ref[...]                                      # (BB, S, L, T)
    locs_planes = [locs[:, s] for s in range(S)]              # each (BB, L, T)
    loc_list = []
    for h in range(H):
        acc = locs_planes[0] * wloc_ref[0, h] + bloc_ref[0, h]
        for s in range(1, S):
            acc = acc + locs_planes[s] * wloc_ref[s, h]
        loc_list.append(acc)
    loc = jnp.maximum(jnp.stack(loc_list, axis=0), 0.0)       # (H, BB, L, T)

    # Key-padding mask, log-clamp, softmax: hoisted, vectorized over heads and batch.
    pad = mask_ref[...].reshape(1, BB, 1, T) > 0.5
    neg_inf = jnp.float32(-jnp.inf)
    scores = jnp.where(pad, neg_inf, scores)
    loc = jnp.where(pad, 0.0, loc)
    fused = jnp.log(jnp.maximum(loc, 1e-6)) + scores
    m = jnp.max(fused, axis=-1, keepdims=True)
    p = jnp.exp(fused - m)
    fused = p / jnp.sum(p, axis=-1, keepdims=True)            # (H, BB, L, T)

    attn_ref[...] = fused                                     # single coalesced store

    # Attention-weighted values, batched over BB per head; concat heads on lanes.
    head_outs = []
    for h in range(H):
        lo = h * dph
        head_outs.append(jnp.einsum(
            'blt,btd->bld', fused[h], V3[:, :, lo:lo + dph],
            preferred_element_type=jnp.float32))
    o = jnp.concatenate(head_outs, axis=-1).reshape(BB * L, D)

    # Output projection (folded M), residual, layer norm.
    o = jnp.dot(o, wfc_ref[...], preferred_element_type=jnp.float32) + bfc_ref[...]
    # TODO(synk): dropout is stochastic; eval-mode (identity) is used here.
    o = o + x_q
    mu = jnp.mean(o, axis=-1, keepdims=True)
    var = jnp.mean((o - mu) ** 2, axis=-1, keepdims=True)
    o = (o - mu) * jax.lax.rsqrt(var + LN_EPS) * gamma_ref[...] + beta_ref[...]
    out_ref[...] = o.reshape(BB, L, D)


def multi_head_attention_spatial(q, k, v, pairwise_locs, key_padding_mask, params,
                                 block_b=None):
    B, L, D = q.shape
    T = k.shape[1]
    S = pairwise_locs.shape[-1]
    H = N_HEAD

    BB = min(B, MAX_BLOCK_B) if block_b is None else min(B, block_b)
    nb = pl.cdiv(B, BB)

    # Layout plumbing in the wrapper: lane-dense (L, T) planes for the spatial term,
    # mask as (B, 1, T) float32.
    locs_t = jnp.transpose(pairwise_locs, (0, 3, 1, 2))        # (B, S, L, T)
    mask3 = key_padding_mask.reshape(B, 1, T).astype(jnp.float32)

    def rep(shape):
        n = len(shape)
        return pl.BlockSpec(shape, lambda b, n=n: (0,) * n)

    smem = pl.BlockSpec(memory_space=pltpu.MemorySpace.SMEM)

    in_specs = [
        pl.BlockSpec((BB, L, D), lambda b: (b, 0, 0)),          # q
        pl.BlockSpec((BB, T, D), lambda b: (b, 0, 0)),          # k
        pl.BlockSpec((BB, T, D), lambda b: (b, 0, 0)),          # v
        pl.BlockSpec((BB, S, L, T), lambda b: (b, 0, 0, 0)),    # pairwise_locs (B,S,L,T)
        pl.BlockSpec((BB, 1, T), lambda b: (b, 0, 0)),          # key_padding_mask
        rep((D, D)), rep((1, D)),                               # w_qs
        rep((D, D)), rep((1, D)),                               # w_ks
        rep((D, D)), rep((1, D)),                               # w_vs
        smem, smem,                                             # pairwise_loc_fc (SMEM)
        rep((D, D)), rep((1, D)),                               # fc
        rep((1, D)), rep((1, D)),                               # layer_norm gamma/beta
    ]
    out_specs = (
        pl.BlockSpec((BB, L, D), lambda b: (b, 0, 0)),
        pl.BlockSpec((H, BB, L, T), lambda b: (0, b, 0, 0)),
    )
    out_shape = (
        jax.ShapeDtypeStruct((B, L, D), jnp.float32),
        jax.ShapeDtypeStruct((H, B, L, T), jnp.float32),
    )
    fn = pl.pallas_call(
        mhas_kernel,
        out_shape=out_shape,
        grid_spec=pltpu.PrefetchScalarGridSpec(
            num_scalar_prefetch=0,
            grid=(nb,),
            in_specs=in_specs,
            out_specs=out_specs,
        ),
        compiler_params=pltpu.CompilerParams(
            dimension_semantics=("parallel",),
            vmem_limit_bytes=32 * 1024 * 1024,
        ),
    )
    return fn(q, k, v, locs_t, mask3,
              params["wq"], params["bq"], params["wk"], params["bk"],
              params["wv"], params["bv"], params["wloc"], params["bloc"],
              params["wfc"], params["bfc"], params["gamma"], params["beta"])


def ref_forward(q, k, v, locs, mask, p):
    """Pure-JAX reference mirroring the PyTorch forward ('mul' fusion, eval mode)."""
    B, L, D = q.shape
    T = k.shape[1]
    H, dph = N_HEAD, D_PER_HEAD
    Q = (q @ p["wq"] + p["bq"]).reshape(B, L, H, dph).transpose(2, 0, 1, 3)
    K = (k @ p["wk"] + p["bk"]).reshape(B, T, H, dph).transpose(2, 0, 1, 3)
    V = (v @ p["wv"] + p["bv"]).reshape(B, T, H, dph).transpose(2, 0, 1, 3)
    attn = jnp.einsum("hblk,hbtk->hblt", Q, K) / np.sqrt(dph)
    loc = jnp.maximum(locs @ p["wloc"] + p["bloc"], 0.0)          # (B,L,T,H)
    loc = loc.transpose(3, 0, 1, 2)                               # (H,B,L,T)
    padm = (mask > 0.5)[None, :, None, :]
    attn = jnp.where(padm, -jnp.inf, attn)
    loc = jnp.where(padm, 0.0, loc)
    fused = jax.nn.softmax(jnp.log(jnp.maximum(loc, 1e-6)) + attn, axis=-1)
    o = jnp.einsum("hblt,hbtv->hblv", fused, V)
    o = o.transpose(1, 2, 0, 3).reshape(B, L, D)
    o = o @ p["wfc"] + p["bfc"] + q
    mu = jnp.mean(o, axis=-1, keepdims=True)
    var = jnp.mean((o - mu) ** 2, axis=-1, keepdims=True)
    o = (o - mu) * jax.lax.rsqrt(var + LN_EPS) * p["gamma"] + p["beta"]
    return o, fused


def init_params(key):
    ks = jax.random.split(key, 8)
    s = 0.02
    return {
        "wq": jax.random.normal(ks[0], (D_MODEL, D_MODEL), jnp.float32) * s,
        "bq": jnp.zeros((1, D_MODEL), jnp.float32),
        "wk": jax.random.normal(ks[1], (D_MODEL, D_MODEL), jnp.float32) * s,
        "bk": jnp.zeros((1, D_MODEL), jnp.float32),
        "wv": jax.random.normal(ks[2], (D_MODEL, D_MODEL), jnp.float32) * s,
        "bv": jnp.zeros((1, D_MODEL), jnp.float32),
        "wloc": jax.random.normal(ks[3], (SPATIAL_DIM, N_HEAD), jnp.float32) * 0.5,
        "bloc": jax.random.normal(ks[4], (1, N_HEAD), jnp.float32) * 0.1,
        "wfc": jax.random.normal(ks[5], (D_MODEL, D_MODEL), jnp.float32) * s,
        "bfc": jnp.zeros((1, D_MODEL), jnp.float32),
        "gamma": jnp.ones((1, D_MODEL), jnp.float32),
        "beta": jnp.zeros((1, D_MODEL), jnp.float32),
    }


if __name__ == "__main__":
    B, L, T = 2, 8, 8
    key = jax.random.PRNGKey(0)
    kq, kk, kv, kl, kp = jax.random.split(key, 5)
    q = jax.random.normal(kq, (B, L, D_MODEL), jnp.float32)
    k = jax.random.normal(kk, (B, T, D_MODEL), jnp.float32)
    v = jax.random.normal(kv, (B, T, D_MODEL), jnp.float32)
    pairwise_locs = jax.random.normal(kl, (B, L, T, SPATIAL_DIM), jnp.float32)
    key_padding_mask = (jnp.zeros((B, T), jnp.float32)
                        .at[0, 6:].set(1.0)
                        .at[1, 7:].set(1.0))
    params = init_params(kp)

    out, fused_attn = multi_head_attention_spatial(
        q, k, v, pairwise_locs, key_padding_mask, params)
    jax.block_until_ready((out, fused_attn))

    out_ref, attn_ref = ref_forward(q, k, v, pairwise_locs, key_padding_mask, params)
    assert np.allclose(np.asarray(out), np.asarray(out_ref), atol=2e-4, rtol=2e-4)
    assert np.allclose(np.asarray(fused_attn), np.asarray(attn_ref), atol=2e-4, rtol=2e-4)
    print("KERNEL_OK")
</pallas_src>

<mosaic_0001>
module attributes {stable_mosaic.version = 11 : i64} {
  func.func @mhas_kernel(%arg0: i32, %arg1: memref<2x8x32xf32, #tpu.memory_space<vmem>>, %arg2: memref<2x8x32xf32, #tpu.memory_space<vmem>>, %arg3: memref<2x8x32xf32, #tpu.memory_space<vmem>>, %arg4: memref<2x5x8x8xf32, #tpu.memory_space<vmem>>, %arg5: memref<2x1x8xf32, #tpu.memory_space<vmem>>, %arg6: memref<32x32xf32, #tpu.memory_space<vmem>>, %arg7: memref<1x32xf32, #tpu.memory_space<vmem>>, %arg8: memref<32x32xf32, #tpu.memory_space<vmem>>, %arg9: memref<1x32xf32, #tpu.memory_space<vmem>>, %arg10: memref<32x32xf32, #tpu.memory_space<vmem>>, %arg11: memref<1x32xf32, #tpu.memory_space<vmem>>, %arg12: memref<5x4xf32, #tpu.memory_space<smem>>, %arg13: memref<1x4xf32, #tpu.memory_space<smem>>, %arg14: memref<32x32xf32, #tpu.memory_space<vmem>>, %arg15: memref<1x32xf32, #tpu.memory_space<vmem>>, %arg16: memref<1x32xf32, #tpu.memory_space<vmem>>, %arg17: memref<1x32xf32, #tpu.memory_space<vmem>>, %arg18: memref<2x8x32xf32, #tpu.memory_space<vmem>>, %arg19: memref<4x2x8x8xf32, #tpu.memory_space<vmem>>) attributes {dimension_semantics = [#tpu.dimension_semantics<parallel>], iteration_bounds = array<i64: 1>, scalar_prefetch = 0 : i64, scratch_operands = 0 : i64, tpu.core_type = #tpu.core_type<tc>, window_params = [{transform_indices = @transform_0, window_bounds = array<i64: 2, 8, 32>}, {transform_indices = @transform_1, window_bounds = array<i64: 2, 8, 32>}, {transform_indices = @transform_2, window_bounds = array<i64: 2, 8, 32>}, {transform_indices = @transform_3, window_bounds = array<i64: 2, 5, 8, 8>}, {transform_indices = @transform_4, window_bounds = array<i64: 2, 1, 8>}, {pipeline_mode = #tpu.pipeline_mode<synchronous>, transform_indices = @transform_5, window_bounds = array<i64: 32, 32>}, {pipeline_mode = #tpu.pipeline_mode<synchronous>, transform_indices = @transform_6, window_bounds = array<i64: 1, 32>}, {pipeline_mode = #tpu.pipeline_mode<synchronous>, transform_indices = @transform_7, window_bounds = array<i64: 32, 32>}, {pipeline_mode = #tpu.pipeline_mode<synchronous>, transform_indices = @transform_8, window_bounds = array<i64: 1, 32>}, {pipeline_mode = #tpu.pipeline_mode<synchronous>, transform_indices = @transform_9, window_bounds = array<i64: 32, 32>}, {pipeline_mode = #tpu.pipeline_mode<synchronous>, transform_indices = @transform_10, window_bounds = array<i64: 1, 32>}, {transform_indices = @transform_11, window_bounds = array<i64: 5, 4>}, {transform_indices = @transform_12, window_bounds = array<i64: 1, 4>}, {pipeline_mode = #tpu.pipeline_mode<synchronous>, transform_indices = @transform_13, window_bounds = array<i64: 32, 32>}, {pipeline_mode = #tpu.pipeline_mode<synchronous>, transform_indices = @transform_14, window_bounds = array<i64: 1, 32>}, {pipeline_mode = #tpu.pipeline_mode<synchronous>, transform_indices = @transform_15, window_bounds = array<i64: 1, 32>}, {pipeline_mode = #tpu.pipeline_mode<synchronous>, transform_indices = @transform_16, window_bounds = array<i64: 1, 32>}, {transform_indices = @transform_17, window_bounds = array<i64: 2, 8, 32>}, {transform_indices = @transform_18, window_bounds = array<i64: 4, 2, 8, 8>}]} {
    %c0 = arith.constant 0 : index
    %c0_0 = arith.constant 0 : index
    %c0_1 = arith.constant 0 : index
    %0 = vector.load %arg1[%c0, %c0_0, %c0_1] : memref<2x8x32xf32, #tpu.memory_space<vmem>>, vector<2x8x32xf32>
    %1 = vector.shape_cast %0 : vector<2x8x32xf32> to vector<16x32xf32>
    %c0_2 = arith.constant 0 : index
    %c0_3 = arith.constant 0 : index
    %c0_4 = arith.constant 0 : index
    %2 = vector.load %arg2[%c0_2, %c0_3, %c0_4] : memref<2x8x32xf32, #tpu.memory_space<vmem>>, vector<2x8x32xf32>
    %3 = vector.shape_cast %2 : vector<2x8x32xf32> to vector<16x32xf32>
    %c0_5 = arith.constant 0 : index
    %c0_6 = arith.constant 0 : index
    %c0_7 = arith.constant 0 : index
    %4 = vector.load %arg3[%c0_5, %c0_6, %c0_7] : memref<2x8x32xf32, #tpu.memory_space<vmem>>, vector<2x8x32xf32>
    %5 = vector.shape_cast %4 : vector<2x8x32xf32> to vector<16x32xf32>
    %c0_8 = arith.constant 0 : index
    %c0_9 = arith.constant 0 : index
    %6 = vector.load %arg6[%c0_8, %c0_9] : memref<32x32xf32, #tpu.memory_space<vmem>>, vector<32x32xf32>
    %cst = arith.constant dense<0.000000e+00> : vector<16x32xf32>
    %7 = tpu.matmul %1, %6, %cst {dimension_numbers = #tpu.dot_dimension_numbers<[1], [0], [0], [1], [0, 0, 1, 1], [], []>} : vector<16x32xf32>, vector<32x32xf32>, vector<16x32xf32> -> vector<16x32xf32>
    %c0_10 = arith.constant 0 : index
    %c0_11 = arith.constant 0 : index
    %8 = vector.load %arg7[%c0_10, %c0_11] : memref<1x32xf32, #tpu.memory_space<vmem>>, vector<1x32xf32>
    %9 = vector.broadcast %8 : vector<1x32xf32> to vector<16x32xf32>
    %10 = arith.addf %7, %9 : vector<16x32xf32>
    %c0_12 = arith.constant 0 : index
    %c0_13 = arith.constant 0 : index
    %11 = vector.load %arg8[%c0_12, %c0_13] : memref<32x32xf32, #tpu.memory_space<vmem>>, vector<32x32xf32>
    %cst_14 = arith.constant dense<0.000000e+00> : vector<16x32xf32>
    %12 = tpu.matmul %3, %11, %cst_14 {dimension_numbers = #tpu.dot_dimension_numbers<[1], [0], [0], [1], [0, 0, 1, 1], [], []>} : vector<16x32xf32>, vector<32x32xf32>, vector<16x32xf32> -> vector<16x32xf32>
    %c0_15 = arith.constant 0 : index
    %c0_16 = arith.constant 0 : index
    %13 = vector.load %arg9[%c0_15, %c0_16] : memref<1x32xf32, #tpu.memory_space<vmem>>, vector<1x32xf32>
    %14 = vector.broadcast %13 : vector<1x32xf32> to vector<16x32xf32>
    %15 = arith.addf %12, %14 : vector<16x32xf32>
    %c0_17 = arith.constant 0 : index
    %c0_18 = arith.constant 0 : index
    %16 = vector.load %arg10[%c0_17, %c0_18] : memref<32x32xf32, #tpu.memory_space<vmem>>, vector<32x32xf32>
    %cst_19 = arith.constant dense<0.000000e+00> : vector<16x32xf32>
    %17 = tpu.matmul %5, %16, %cst_19 {dimension_numbers = #tpu.dot_dimension_numbers<[1], [0], [0], [1], [0, 0, 1, 1], [], []>} : vector<16x32xf32>, vector<32x32xf32>, vector<16x32xf32> -> vector<16x32xf32>
    %c0_20 = arith.constant 0 : index
    %c0_21 = arith.constant 0 : index
    %18 = vector.load %arg11[%c0_20, %c0_21] : memref<1x32xf32, #tpu.memory_space<vmem>>, vector<1x32xf32>
    %19 = vector.broadcast %18 : vector<1x32xf32> to vector<16x32xf32>
    %20 = arith.addf %17, %19 : vector<16x32xf32>
    %21 = vector.shape_cast %10 : vector<16x32xf32> to vector<2x8x32xf32>
    %22 = vector.shape_cast %15 : vector<16x32xf32> to vector<2x8x32xf32>
    %23 = vector.shape_cast %20 : vector<16x32xf32> to vector<2x8x32xf32>
    %24 = vector.extract_strided_slice %21 {offsets = [0, 0, 0], sizes = [2, 8, 8], strides = [1, 1, 1]} : vector<2x8x32xf32> to vector<2x8x8xf32>
    %25 = vector.extract_strided_slice %22 {offsets = [0, 0, 0], sizes = [2, 8, 8], strides = [1, 1, 1]} : vector<2x8x32xf32> to vector<2x8x8xf32>
    "tpu.trace_start"() <{level = 10 : i32, message = "bld,btd->blt"}> : () -> ()
    %cst_22 = arith.constant dense<0.000000e+00> : vector<2x8x8xf32>
    %26 = tpu.matmul %24, %25, %cst_22 {dimension_numbers = #tpu.dot_dimension_numbers<[2], [2], [1], [1], [0, 0, 0, 1, 1, 1], [0], [0]>} : vector<2x8x8xf32>, vector<2x8x8xf32>, vector<2x8x8xf32> -> vector<2x8x8xf32>
    "tpu.trace_stop"() : () -> ()
    %27 = vector.extract_strided_slice %21 {offsets = [0, 0, 8], sizes = [2, 8, 8], strides = [1, 1, 1]} : vector<2x8x32xf32> to vector<2x8x8xf32>
    %28 = vector.extract_strided_slice %22 {offsets = [0, 0, 8], sizes = [2, 8, 8], strides = [1, 1, 1]} : vector<2x8x32xf32> to vector<2x8x8xf32>
    "tpu.trace_start"() <{level = 10 : i32, message = "bld,btd->blt"}> : () -> ()
    %cst_23 = arith.constant dense<0.000000e+00> : vector<2x8x8xf32>
    %29 = tpu.matmul %27, %28, %cst_23 {dimension_numbers = #tpu.dot_dimension_numbers<[2], [2], [1], [1], [0, 0, 0, 1, 1, 1], [0], [0]>} : vector<2x8x8xf32>, vector<2x8x8xf32>, vector<2x8x8xf32> -> vector<2x8x8xf32>
    "tpu.trace_stop"() : () -> ()
    %30 = vector.extract_strided_slice %21 {offsets = [0, 0, 16], sizes = [2, 8, 8], strides = [1, 1, 1]} : vector<2x8x32xf32> to vector<2x8x8xf32>
    %31 = vector.extract_strided_slice %22 {offsets = [0, 0, 16], sizes = [2, 8, 8], strides = [1, 1, 1]} : vector<2x8x32xf32> to vector<2x8x8xf32>
    "tpu.trace_start"() <{level = 10 : i32, message = "bld,btd->blt"}> : () -> ()
    %cst_24 = arith.constant dense<0.000000e+00> : vector<2x8x8xf32>
    %32 = tpu.matmul %30, %31, %cst_24 {dimension_numbers = #tpu.dot_dimension_numbers<[2], [2], [1], [1], [0, 0, 0, 1, 1, 1], [0], [0]>} : vector<2x8x8xf32>, vector<2x8x8xf32>, vector<2x8x8xf32> -> vector<2x8x8xf32>
    "tpu.trace_stop"() : () -> ()
    %33 = vector.extract_strided_slice %21 {offsets = [0, 0, 24], sizes = [2, 8, 8], strides = [1, 1, 1]} : vector<2x8x32xf32> to vector<2x8x8xf32>
    %34 = vector.extract_strided_slice %22 {offsets = [0, 0, 24], sizes = [2, 8, 8], strides = [1, 1, 1]} : vector<2x8x32xf32> to vector<2x8x8xf32>
    "tpu.trace_start"() <{level = 10 : i32, message = "bld,btd->blt"}> : () -> ()
    %cst_25 = arith.constant dense<0.000000e+00> : vector<2x8x8xf32>
    %35 = tpu.matmul %33, %34, %cst_25 {dimension_numbers = #tpu.dot_dimension_numbers<[2], [2], [1], [1], [0, 0, 0, 1, 1, 1], [0], [0]>} : vector<2x8x8xf32>, vector<2x8x8xf32>, vector<2x8x8xf32> -> vector<2x8x8xf32>
    "tpu.trace_stop"() : () -> ()
    %36 = vector.shape_cast %26 : vector<2x8x8xf32> to vector<1x2x8x8xf32>
    %37 = vector.shape_cast %29 : vector<2x8x8xf32> to vector<1x2x8x8xf32>
    %38 = vector.shape_cast %32 : vector<2x8x8xf32> to vector<1x2x8x8xf32>
    %39 = vector.shape_cast %35 : vector<2x8x8xf32> to vector<1x2x8x8xf32>
    %40 = tpu.concatenate %36, %37, %38, %39 in 0 : vector<1x2x8x8xf32>, vector<1x2x8x8xf32>, vector<1x2x8x8xf32>, vector<1x2x8x8xf32> -> vector<4x2x8x8xf32>
    %cst_26 = arith.constant 0.353553385 : f32
    %41 = vector.broadcast %cst_26 : f32 to vector<4x2x8x8xf32>
    %42 = arith.mulf %40, %41 : vector<4x2x8x8xf32>
    %c0_27 = arith.constant 0 : index
    %c0_28 = arith.constant 0 : index
    %c0_29 = arith.constant 0 : index
    %c0_30 = arith.constant 0 : index
    %43 = vector.load %arg4[%c0_27, %c0_28, %c0_29, %c0_30] : memref<2x5x8x8xf32, #tpu.memory_space<vmem>>, vector<2x5x8x8xf32>
    %44 = vector.extract_strided_slice %43 {offsets = [0, 0, 0, 0], sizes = [2, 1, 8, 8], strides = [1, 1, 1, 1]} : vector<2x5x8x8xf32> to vector<2x1x8x8xf32>
    %45 = vector.shape_cast %44 : vector<2x1x8x8xf32> to vector<2x8x8xf32>
    %46 = vector.extract_strided_slice %43 {offsets = [0, 1, 0, 0], sizes = [2, 1, 8, 8], strides = [1, 1, 1, 1]} : vector<2x5x8x8xf32> to vector<2x1x8x8xf32>
    %47 = vector.shape_cast %46 : vector<2x1x8x8xf32> to vector<2x8x8xf32>
    %48 = vector.extract_strided_slice %43 {offsets = [0, 2, 0, 0], sizes = [2, 1, 8, 8], strides = [1, 1, 1, 1]} : vector<2x5x8x8xf32> to vector<2x1x8x8xf32>
    %49 = vector.shape_cast %48 : vector<2x1x8x8xf32> to vector<2x8x8xf32>
    %50 = vector.extract_strided_slice %43 {offsets = [0, 3, 0, 0], sizes = [2, 1, 8, 8], strides = [1, 1, 1, 1]} : vector<2x5x8x8xf32> to vector<2x1x8x8xf32>
    %51 = vector.shape_cast %50 : vector<2x1x8x8xf32> to vector<2x8x8xf32>
    %52 = vector.extract_strided_slice %43 {offsets = [0, 4, 0, 0], sizes = [2, 1, 8, 8], strides = [1, 1, 1, 1]} : vector<2x5x8x8xf32> to vector<2x1x8x8xf32>
    %53 = vector.shape_cast %52 : vector<2x1x8x8xf32> to vector<2x8x8xf32>
    %c0_31 = arith.constant 0 : index
    %c0_32 = arith.constant 0 : index
    %54 = memref.load %arg12[%c0_31, %c0_32] : memref<5x4xf32, #tpu.memory_space<smem>>
    %55 = vector.broadcast %54 : f32 to vector<2x8x8xf32>
    %56 = arith.mulf %45, %55 : vector<2x8x8xf32>
    %c0_33 = arith.constant 0 : index
    %c0_34 = arith.constant 0 : index
    %57 = memref.load %arg13[%c0_33, %c0_34] : memref<1x4xf32, #tpu.memory_space<smem>>
    %58 = vector.broadcast %57 : f32 to vector<2x8x8xf32>
    %59 = arith.addf %56, %58 : vector<2x8x8xf32>
    %c1 = arith.constant 1 : index
    %c0_35 = arith.constant 0 : index
    %60 = memref.load %arg12[%c1, %c0_35] : memref<5x4xf32, #tpu.memory_space<smem>>
    %61 = vector.broadcast %60 : f32 to vector<2x8x8xf32>
    %62 = arith.mulf %47, %61 : vector<2x8x8xf32>
    %63 = arith.addf %59, %62 : vector<2x8x8xf32>
    %c2 = arith.constant 2 : index
    %c0_36 = arith.constant 0 : index
    %64 = memref.load %arg12[%c2, %c0_36] : memref<5x4xf32, #tpu.memory_space<smem>>
    %65 = vector.broadcast %64 : f32 to vector<2x8x8xf32>
    %66 = arith.mulf %49, %65 : vector<2x8x8xf32>
    %67 = arith.addf %63, %66 : vector<2x8x8xf32>
    %c3 = arith.constant 3 : index
    %c0_37 = arith.constant 0 : index
    %68 = memref.load %arg12[%c3, %c0_37] : memref<5x4xf32, #tpu.memory_space<smem>>
    %69 = vector.broadcast %68 : f32 to vector<2x8x8xf32>
    %70 = arith.mulf %51, %69 : vector<2x8x8xf32>
    %71 = arith.addf %67, %70 : vector<2x8x8xf32>
    %c4 = arith.constant 4 : index
    %c0_38 = arith.constant 0 : index
    %72 = memref.load %arg12[%c4, %c0_38] : memref<5x4xf32, #tpu.memory_space<smem>>
    %73 = vector.broadcast %72 : f32 to vector<2x8x8xf32>
    %74 = arith.mulf %53, %73 : vector<2x8x8xf32>
    %75 = arith.addf %71, %74 : vector<2x8x8xf32>
    %c0_39 = arith.constant 0 : index
    %c1_40 = arith.constant 1 : index
    %76 = memref.load %arg12[%c0_39, %c1_40] : memref<5x4xf32, #tpu.memory_space<smem>>
    %77 = vector.broadcast %76 : f32 to vector<2x8x8xf32>
    %78 = arith.mulf %45, %77 : vector<2x8x8xf32>
    %c0_41 = arith.constant 0 : index
    %c1_42 = arith.constant 1 : index
    %79 = memref.load %arg13[%c0_41, %c1_42] : memref<1x4xf32, #tpu.memory_space<smem>>
    %80 = vector.broadcast %79 : f32 to vector<2x8x8xf32>
    %81 = arith.addf %78, %80 : vector<2x8x8xf32>
    %c1_43 = arith.constant 1 : index
    %c1_44 = arith.constant 1 : index
    %82 = memref.load %arg12[%c1_43, %c1_44] : memref<5x4xf32, #tpu.memory_space<smem>>
    %83 = vector.broadcast %82 : f32 to vector<2x8x8xf32>
    %84 = arith.mulf %47, %83 : vector<2x8x8xf32>
    %85 = arith.addf %81, %84 : vector<2x8x8xf32>
    %c2_45 = arith.constant 2 : index
    %c1_46 = arith.constant 1 : index
    %86 = memref.load %arg12[%c2_45, %c1_46] : memref<5x4xf32, #tpu.memory_space<smem>>
    %87 = vector.broadcast %86 : f32 to vector<2x8x8xf32>
    %88 = arith.mulf %49, %87 : vector<2x8x8xf32>
    %89 = arith.addf %85, %88 : vector<2x8x8xf32>
    %c3_47 = arith.constant 3 : index
    %c1_48 = arith.constant 1 : index
    %90 = memref.load %arg12[%c3_47, %c1_48] : memref<5x4xf32, #tpu.memory_space<smem>>
    %91 = vector.broadcast %90 : f32 to vector<2x8x8xf32>
    %92 = arith.mulf %51, %91 : vector<2x8x8xf32>
    %93 = arith.addf %89, %92 : vector<2x8x8xf32>
    %c4_49 = arith.constant 4 : index
    %c1_50 = arith.constant 1 : index
    %94 = memref.load %arg12[%c4_49, %c1_50] : memref<5x4xf32, #tpu.memory_space<smem>>
    %95 = vector.broadcast %94 : f32 to vector<2x8x8xf32>
    %96 = arith.mulf %53, %95 : vector<2x8x8xf32>
    %97 = arith.addf %93, %96 : vector<2x8x8xf32>
    %c0_51 = arith.constant 0 : index
    %c2_52 = arith.constant 2 : index
    %98 = memref.load %arg12[%c0_51, %c2_52] : memref<5x4xf32, #tpu.memory_space<smem>>
    %99 = vector.broadcast %98 : f32 to vector<2x8x8xf32>
    %100 = arith.mulf %45, %99 : vector<2x8x8xf32>
    %c0_53 = arith.constant 0 : index
    %c2_54 = arith.constant 2 : index
    %101 = memref.load %arg13[%c0_53, %c2_54] : memref<1x4xf32, #tpu.memory_space<smem>>
    %102 = vector.broadcast %101 : f32 to vector<2x8x8xf32>
    %103 = arith.addf %100, %102 : vector<2x8x8xf32>
    %c1_55 = arith.constant 1 : index
    %c2_56 = arith.constant 2 : index
    %104 = memref.load %arg12[%c1_55, %c2_56] : memref<5x4xf32, #tpu.memory_space<smem>>
    %105 = vector.broadcast %104 : f32 to vector<2x8x8xf32>
    %106 = arith.mulf %47, %105 : vector<2x8x8xf32>
    %107 = arith.addf %103, %106 : vector<2x8x8xf32>
    %c2_57 = arith.constant 2 : index
    %c2_58 = arith.constant 2 : index
    %108 = memref.load %arg12[%c2_57, %c2_58] : memref<5x4xf32, #tpu.memory_space<smem>>
    %109 = vector.broadcast %108 : f32 to vector<2x8x8xf32>
    %110 = arith.mulf %49, %109 : vector<2x8x8xf32>
    %111 = arith.addf %107, %110 : vector<2x8x8xf32>
    %c3_59 = arith.constant 3 : index
    %c2_60 = arith.constant 2 : index
    %112 = memref.load %arg12[%c3_59, %c2_60] : memref<5x4xf32, #tpu.memory_space<smem>>
    %113 = vector.broadcast %112 : f32 to vector<2x8x8xf32>
    %114 = arith.mulf %51, %113 : vector<2x8x8xf32>
    %115 = arith.addf %111, %114 : vector<2x8x8xf32>
    %c4_61 = arith.constant 4 : index
    %c2_62 = arith.constant 2 : index
    %116 = memref.load %arg12[%c4_61, %c2_62] : memref<5x4xf32, #tpu.memory_space<smem>>
    %117 = vector.broadcast %116 : f32 to vector<2x8x8xf32>
    %118 = arith.mulf %53, %117 : vector<2x8x8xf32>
    %119 = arith.addf %115, %118 : vector<2x8x8xf32>
    %c0_63 = arith.constant 0 : index
    %c3_64 = arith.constant 3 : index
    %120 = memref.load %arg12[%c0_63, %c3_64] : memref<5x4xf32, #tpu.memory_space<smem>>
    %121 = vector.broadcast %120 : f32 to vector<2x8x8xf32>
    %122 = arith.mulf %45, %121 : vector<2x8x8xf32>
    %c0_65 = arith.constant 0 : index
    %c3_66 = arith.constant 3 : index
    %123 = memref.load %arg13[%c0_65, %c3_66] : memref<1x4xf32, #tpu.memory_space<smem>>
    %124 = vector.broadcast %123 : f32 to vector<2x8x8xf32>
    %125 = arith.addf %122, %124 : vector<2x8x8xf32>
    %c1_67 = arith.constant 1 : index
    %c3_68 = arith.constant 3 : index
    %126 = memref.load %arg12[%c1_67, %c3_68] : memref<5x4xf32, #tpu.memory_space<smem>>
    %127 = vector.broadcast %126 : f32 to vector<2x8x8xf32>
    %128 = arith.mulf %47, %127 : vector<2x8x8xf32>
    %129 = arith.addf %125, %128 : vector<2x8x8xf32>
    %c2_69 = arith.constant 2 : index
    %c3_70 = arith.constant 3 : index
    %130 = memref.load %arg12[%c2_69, %c3_70] : memref<5x4xf32, #tpu.memory_space<smem>>
    %131 = vector.broadcast %130 : f32 to vector<2x8x8xf32>
    %132 = arith.mulf %49, %131 : vector<2x8x8xf32>
    %133 = arith.addf %129, %132 : vector<2x8x8xf32>
    %c3_71 = arith.constant 3 : index
    %c3_72 = arith.constant 3 : index
    %134 = memref.load %arg12[%c3_71, %c3_72] : memref<5x4xf32, #tpu.memory_space<smem>>
    %135 = vector.broadcast %134 : f32 to vector<2x8x8xf32>
    %136 = arith.mulf %51, %135 : vector<2x8x8xf32>
    %137 = arith.addf %133, %136 : vector<2x8x8xf32>
    %c4_73 = arith.constant 4 : index
    %c3_74 = arith.constant 3 : index
    %138 = memref.load %arg12[%c4_73, %c3_74] : memref<5x4xf32, #tpu.memory_space<smem>>
    %139 = vector.broadcast %138 : f32 to vector<2x8x8xf32>
    %140 = arith.mulf %53, %139 : vector<2x8x8xf32>
    %141 = arith.addf %137, %140 : vector<2x8x8xf32>
    %142 = vector.shape_cast %75 : vector<2x8x8xf32> to vector<1x2x8x8xf32>
    %143 = vector.shape_cast %97 : vector<2x8x8xf32> to vector<1x2x8x8xf32>
    %144 = vector.shape_cast %119 : vector<2x8x8xf32> to vector<1x2x8x8xf32>
    %145 = vector.shape_cast %141 : vector<2x8x8xf32> to vector<1x2x8x8xf32>
    %146 = tpu.concatenate %142, %143, %144, %145 in 0 : vector<1x2x8x8xf32>, vector<1x2x8x8xf32>, vector<1x2x8x8xf32>, vector<1x2x8x8xf32> -> vector<4x2x8x8xf32>
    %cst_75 = arith.constant 0.000000e+00 : f32
    %147 = vector.broadcast %cst_75 : f32 to vector<4x2x8x8xf32>
    %148 = arith.maximumf %146, %147 : vector<4x2x8x8xf32>
    %c0_76 = arith.constant 0 : index
    %c0_77 = arith.constant 0 : index
    %c0_78 = arith.constant 0 : index
    %149 = vector.load %arg5[%c0_76, %c0_77, %c0_78] : memref<2x1x8xf32, #tpu.memory_space<vmem>>, vector<2x1x8xf32>
    %150 = vector.shape_cast %149 : vector<2x1x8xf32> to vector<1x2x1x8xf32>
    %cst_79 = arith.constant 5.000000e-01 : f32
    %151 = vector.broadcast %cst_79 : f32 to vector<1x2x1x8xf32>
    %152 = arith.cmpf ogt, %150, %151 : vector<1x2x1x8xf32>
    %cst_80 = arith.constant 0xFF800000 : f32
    %153 = vector.shape_cast %152 : vector<1x2x1x8xi1> to vector<1x2x1x8xi1>
    %154 = vector.broadcast %153 : vector<1x2x1x8xi1> to vector<4x2x8x8xi1>
    %155 = vector.broadcast %cst_80 : f32 to vector<4x2x8x8xf32>
    %156 = arith.select %154, %155, %42 : vector<4x2x8x8xi1>, vector<4x2x8x8xf32>
    %cst_81 = arith.constant 0.000000e+00 : f32
    %157 = vector.shape_cast %152 : vector<1x2x1x8xi1> to vector<1x2x1x8xi1>
    %158 = vector.broadcast %157 : vector<1x2x1x8xi1> to vector<4x2x8x8xi1>
    %159 = vector.broadcast %cst_81 : f32 to vector<4x2x8x8xf32>
    %160 = arith.select %158, %159, %148 : vector<4x2x8x8xi1>, vector<4x2x8x8xf32>
    %cst_82 = arith.constant 9.99999997E-7 : f32
    %161 = vector.broadcast %cst_82 : f32 to vector<4x2x8x8xf32>
    %162 = arith.maximumf %160, %161 : vector<4x2x8x8xf32>
    %163 = math.log %162 : vector<4x2x8x8xf32>
    %164 = arith.addf %163, %156 : vector<4x2x8x8xf32>
    %cst_83 = arith.constant dense<0xFF800000> : vector<4x2x8xf32>
    %165 = vector.multi_reduction <maximumf>, %164, %cst_83 [3] : vector<4x2x8x8xf32> to vector<4x2x8xf32>
    %166 = vector.shape_cast %165 : vector<4x2x8xf32> to vector<4x2x8x1xf32>
    %167 = vector.broadcast %166 : vector<4x2x8x1xf32> to vector<4x2x8x8xf32>
    %168 = arith.subf %164, %167 : vector<4x2x8x8xf32>
    %169 = math.exp %168 : vector<4x2x8x8xf32>
    %cst_84 = arith.constant dense<0.000000e+00> : vector<4x2x8xf32>
    %170 = vector.multi_reduction <add>, %169, %cst_84 [3] : vector<4x2x8x8xf32> to vector<4x2x8xf32>
    %171 = vector.shape_cast %170 : vector<4x2x8xf32> to vector<4x2x8x1xf32>
    %172 = vector.broadcast %171 : vector<4x2x8x1xf32> to vector<4x2x8x8xf32>
    %173 = arith.divf %169, %172 : vector<4x2x8x8xf32>
    %c0_85 = arith.constant 0 : index
    %c0_86 = arith.constant 0 : index
    %c0_87 = arith.constant 0 : index
    %c0_88 = arith.constant 0 : index
    %174 = vector.load %arg19[%c0_85, %c0_86, %c0_87, %c0_88] : memref<4x2x8x8xf32, #tpu.memory_space<vmem>>, vector<4x2x8x8xf32>
    tpu.vector_store %arg19[%c0_85, %c0_86, %c0_87, %c0_88], %173 {strides = array<i32>} : memref<4x2x8x8xf32, #tpu.memory_space<vmem>>, vector<4x2x8x8xf32>,
    %175 = vector.extract_strided_slice %173 {offsets = [0, 0, 0, 0], sizes = [1, 2, 8, 8], strides = [1, 1, 1, 1]} : vector<4x2x8x8xf32> to vector<1x2x8x8xf32>
    %176 = vector.shape_cast %175 : vector<1x2x8x8xf32> to vector<2x8x8xf32>
    %177 = vector.extract_strided_slice %23 {offsets = [0, 0, 0], sizes = [2, 8, 8], strides = [1, 1, 1]} : vector<2x8x32xf32> to vector<2x8x8xf32>
    "tpu.trace_start"() <{level = 10 : i32, message = "blt,btd->bld"}> : () -> ()
    %cst_89 = arith.constant dense<0.000000e+00> : vector<2x8x8xf32>
    %178 = tpu.matmul %176, %177, %cst_89 {dimension_numbers = #tpu.dot_dimension_numbers<[2], [1], [1], [2], [0, 0, 0, 1, 1, 2], [0], [0]>} : vector<2x8x8xf32>, vector<2x8x8xf32>, vector<2x8x8xf32> -> vector<2x8x8xf32>
    "tpu.trace_stop"() : () -> ()
    %179 = vector.extract_strided_slice %173 {offsets = [1, 0, 0, 0], sizes = [1, 2, 8, 8], strides = [1, 1, 1, 1]} : vector<4x2x8x8xf32> to vector<1x2x8x8xf32>
    %180 = vector.shape_cast %179 : vector<1x2x8x8xf32> to vector<2x8x8xf32>
    %181 = vector.extract_strided_slice %23 {offsets = [0, 0, 8], sizes = [2, 8, 8], strides = [1, 1, 1]} : vector<2x8x32xf32> to vector<2x8x8xf32>
    "tpu.trace_start"() <{level = 10 : i32, message = "blt,btd->bld"}> : () -> ()
    %cst_90 = arith.constant dense<0.000000e+00> : vector<2x8x8xf32>
    %182 = tpu.matmul %180, %181, %cst_90 {dimension_numbers = #tpu.dot_dimension_numbers<[2], [1], [1], [2], [0, 0, 0, 1, 1, 2], [0], [0]>} : vector<2x8x8xf32>, vector<2x8x8xf32>, vector<2x8x8xf32> -> vector<2x8x8xf32>
    "tpu.trace_stop"() : () -> ()
    %183 = vector.extract_strided_slice %173 {offsets = [2, 0, 0, 0], sizes = [1, 2, 8, 8], strides = [1, 1, 1, 1]} : vector<4x2x8x8xf32> to vector<1x2x8x8xf32>
    %184 = vector.shape_cast %183 : vector<1x2x8x8xf32> to vector<2x8x8xf32>
    %185 = vector.extract_strided_slice %23 {offsets = [0, 0, 16], sizes = [2, 8, 8], strides = [1, 1, 1]} : vector<2x8x32xf32> to vector<2x8x8xf32>
    "tpu.trace_start"() <{level = 10 : i32, message = "blt,btd->bld"}> : () -> ()
    %cst_91 = arith.constant dense<0.000000e+00> : vector<2x8x8xf32>
    %186 = tpu.matmul %184, %185, %cst_91 {dimension_numbers = #tpu.dot_dimension_numbers<[2], [1], [1], [2], [0, 0, 0, 1, 1, 2], [0], [0]>} : vector<2x8x8xf32>, vector<2x8x8xf32>, vector<2x8x8xf32> -> vector<2x8x8xf32>
    "tpu.trace_stop"() : () -> ()
    %187 = vector.extract_strided_slice %173 {offsets = [3, 0, 0, 0], sizes = [1, 2, 8, 8], strides = [1, 1, 1, 1]} : vector<4x2x8x8xf32> to vector<1x2x8x8xf32>
    %188 = vector.shape_cast %187 : vector<1x2x8x8xf32> to vector<2x8x8xf32>
    %189 = vector.extract_strided_slice %23 {offsets = [0, 0, 24], sizes = [2, 8, 8], strides = [1, 1, 1]} : vector<2x8x32xf32> to vector<2x8x8xf32>
    "tpu.trace_start"() <{level = 10 : i32, message = "blt,btd->bld"}> : () -> ()
    %cst_92 = arith.constant dense<0.000000e+00> : vector<2x8x8xf32>
    %190 = tpu.matmul %188, %189, %cst_92 {dimension_numbers = #tpu.dot_dimension_numbers<[2], [1], [1], [2], [0, 0, 0, 1, 1, 2], [0], [0]>} : vector<2x8x8xf32>, vector<2x8x8xf32>, vector<2x8x8xf32> -> vector<2x8x8xf32>
    "tpu.trace_stop"() : () -> ()
    %191 = tpu.concatenate %178, %182, %186, %190 in 2 : vector<2x8x8xf32>, vector<2x8x8xf32>, vector<2x8x8xf32>, vector<2x8x8xf32> -> vector<2x8x32xf32>
    %192 = vector.shape_cast %191 : vector<2x8x32xf32> to vector<16x32xf32>
    %c0_93 = arith.constant 0 : index
    %c0_94 = arith.constant 0 : index
    %193 = vector.load %arg14[%c0_93, %c0_94] : memref<32x32xf32, #tpu.memory_space<vmem>>, vector<32x32xf32>
    %cst_95 = arith.constant dense<0.000000e+00> : vector<16x32xf32>
    %194 = tpu.matmul %192, %193, %cst_95 {dimension_numbers = #tpu.dot_dimension_numbers<[1], [0], [0], [1], [0, 0, 1, 1], [], []>} : vector<16x32xf32>, vector<32x32xf32>, vector<16x32xf32> -> vector<16x32xf32>
    %c0_96 = arith.constant 0 : index
    %c0_97 = arith.constant 0 : index
    %195 = vector.load %arg15[%c0_96, %c0_97] : memref<1x32xf32, #tpu.memory_space<vmem>>, vector<1x32xf32>
    %196 = vector.broadcast %195 : vector<1x32xf32> to vector<16x32xf32>
    %197 = arith.addf %194, %196 : vector<16x32xf32>
    %198 = arith.addf %197, %1 : vector<16x32xf32>
    %cst_98 = arith.constant dense<0.000000e+00> : vector<16xf32>
    %199 = vector.multi_reduction <add>, %198, %cst_98 [1] : vector<16x32xf32> to vector<16xf32>
    %200 = vector.shape_cast %199 : vector<16xf32> to vector<16x1xf32>
    %cst_99 = arith.constant 3.200000e+01 : f32
    %201 = vector.broadcast %cst_99 : f32 to vector<16x1xf32>
    %202 = arith.divf %200, %201 : vector<16x1xf32>
    %203 = vector.broadcast %202 : vector<16x1xf32> to vector<16x32xf32>
    %204 = arith.subf %198, %203 : vector<16x32xf32>
    %205 = arith.mulf %204, %204 : vector<16x32xf32>
    %cst_100 = arith.constant dense<0.000000e+00> : vector<16xf32>
    %206 = vector.multi_reduction <add>, %205, %cst_100 [1] : vector<16x32xf32> to vector<16xf32>
    %207 = vector.shape_cast %206 : vector<16xf32> to vector<16x1xf32>
    %cst_101 = arith.constant 3.200000e+01 : f32
    %208 = vector.broadcast %cst_101 : f32 to vector<16x1xf32>
    %209 = arith.divf %207, %208 : vector<16x1xf32>
    %210 = vector.broadcast %202 : vector<16x1xf32> to vector<16x32xf32>
    %211 = arith.subf %198, %210 : vector<16x32xf32>
    %cst_102 = arith.constant 9.99999974E-6 : f32
    %212 = vector.broadcast %cst_102 : f32 to vector<16x1xf32>
    %213 = arith.addf %209, %212 : vector<16x1xf32>
    %214 = math.rsqrt %213 : vector<16x1xf32>
    %215 = vector.broadcast %214 : vector<16x1xf32> to vector<16x32xf32>
    %216 = arith.mulf %211, %215 : vector<16x32xf32>
    %c0_103 = arith.constant 0 : index
    %c0_104 = arith.constant 0 : index
    %217 = vector.load %arg16[%c0_103, %c0_104] : memref<1x32xf32, #tpu.memory_space<vmem>>, vector<1x32xf32>
    %218 = vector.broadcast %217 : vector<1x32xf32> to vector<16x32xf32>
    %219 = arith.mulf %216, %218 : vector<16x32xf32>
    %c0_105 = arith.constant 0 : index
    %c0_106 = arith.constant 0 : index
    %220 = vector.load %arg17[%c0_105, %c0_106] : memref<1x32xf32, #tpu.memory_space<vmem>>, vector<1x32xf32>
    %221 = vector.broadcast %220 : vector<1x32xf32> to vector<16x32xf32>
    %222 = arith.addf %219, %221 : vector<16x32xf32>
    %223 = vector.shape_cast %222 : vector<16x32xf32> to vector<2x8x32xf32>
    %c0_107 = arith.constant 0 : index
    %c0_108 = arith.constant 0 : index
    %c0_109 = arith.constant 0 : index
    %224 = vector.load %arg18[%c0_107, %c0_108, %c0_109] : memref<2x8x32xf32, #tpu.memory_space<vmem>>, vector<2x8x32xf32>
    tpu.vector_store %arg18[%c0_107, %c0_108, %c0_109], %223 {strides = array<i32>} : memref<2x8x32xf32, #tpu.memory_space<vmem>>, vector<2x8x32xf32>,
    return
  }
  func.func @transform_0(%arg0: i32) -> (i32, i32, i32) {
    %c0_i32 = arith.constant 0 : i32
    %c0_i32_0 = arith.constant 0 : i32
    %c0_i32_1 = arith.constant 0 : i32
    return %arg0, %c0_i32, %c0_i32_0 : i32, i32, i32
  }
  func.func @transform_1(%arg0: i32) -> (i32, i32, i32) {
    %c0_i32 = arith.constant 0 : i32
    %c0_i32_0 = arith.constant 0 : i32
    %c0_i32_1 = arith.constant 0 : i32
    return %arg0, %c0_i32, %c0_i32_0 : i32, i32, i32
  }
  func.func @transform_2(%arg0: i32) -> (i32, i32, i32) {
    %c0_i32 = arith.constant 0 : i32
    %c0_i32_0 = arith.constant 0 : i32
    %c0_i32_1 = arith.constant 0 : i32
    return %arg0, %c0_i32, %c0_i32_0 : i32, i32, i32
  }
  func.func @transform_3(%arg0: i32) -> (i32, i32, i32, i32) {
    %c0_i32 = arith.constant 0 : i32
    %c0_i32_0 = arith.constant 0 : i32
    %c0_i32_1 = arith.constant 0 : i32
    %c0_i32_2 = arith.constant 0 : i32
    return %arg0, %c0_i32, %c0_i32_0, %c0_i32_1 : i32, i32, i32, i32
  }
  func.func @transform_4(%arg0: i32) -> (i32, i32, i32) {
    %c0_i32 = arith.constant 0 : i32
    %c0_i32_0 = arith.constant 0 : i32
    %c0_i32_1 = arith.constant 0 : i32
    return %arg0, %c0_i32, %c0_i32_0 : i32, i32, i32
  }
  func.func @transform_5(%arg0: i32) -> (i32, i32) {
    %c0_i32 = arith.constant 0 : i32
    %c0_i32_0 = arith.constant 0 : i32
    %c0_i32_1 = arith.constant 0 : i32
    return %c0_i32, %c0_i32_0 : i32, i32
  }
  func.func @transform_6(%arg0: i32) -> (i32, i32) {
    %c0_i32 = arith.constant 0 : i32
    %c0_i32_0 = arith.constant 0 : i32
    %c0_i32_1 = arith.constant 0 : i32
    return %c0_i32, %c0_i32_0 : i32, i32
  }
  func.func @transform_7(%arg0: i32) -> (i32, i32) {
    %c0_i32 = arith.constant 0 : i32
    %c0_i32_0 = arith.constant 0 : i32
    %c0_i32_1 = arith.constant 0 : i32
    return %c0_i32, %c0_i32_0 : i32, i32
  }
  func.func @transform_8(%arg0: i32) -> (i32, i32) {
    %c0_i32 = arith.constant 0 : i32
    %c0_i32_0 = arith.constant 0 : i32
    %c0_i32_1 = arith.constant 0 : i32
    return %c0_i32, %c0_i32_0 : i32, i32
  }
  func.func @transform_9(%arg0: i32) -> (i32, i32) {
    %c0_i32 = arith.constant 0 : i32
    %c0_i32_0 = arith.constant 0 : i32
    %c0_i32_1 = arith.constant 0 : i32
    return %c0_i32, %c0_i32_0 : i32, i32
  }
  func.func @transform_10(%arg0: i32) -> (i32, i32) {
    %c0_i32 = arith.constant 0 : i32
    %c0_i32_0 = arith.constant 0 : i32
    %c0_i32_1 = arith.constant 0 : i32
    return %c0_i32, %c0_i32_0 : i32, i32
  }
  func.func @transform_11(%arg0: i32) -> (i32, i32) {
    %c0_i32 = arith.constant 0 : i32
    %c0_i32_0 = arith.constant 0 : i32
    %c0_i32_1 = arith.constant 0 : i32
    return %c0_i32, %c0_i32_0 : i32, i32
  }
  func.func @transform_12(%arg0: i32) -> (i32, i32) {
    %c0_i32 = arith.constant 0 : i32
    %c0_i32_0 = arith.constant 0 : i32
    %c0_i32_1 = arith.constant 0 : i32
    return %c0_i32, %c0_i32_0 : i32, i32
  }
  func.func @transform_13(%arg0: i32) -> (i32, i32) {
    %c0_i32 = arith.constant 0 : i32
    %c0_i32_0 = arith.constant 0 : i32
    %c0_i32_1 = arith.constant 0 : i32
    return %c0_i32, %c0_i32_0 : i32, i32
  }
  func.func @transform_14(%arg0: i32) -> (i32, i32) {
    %c0_i32 = arith.constant 0 : i32
    %c0_i32_0 = arith.constant 0 : i32
    %c0_i32_1 = arith.constant 0 : i32
    return %c0_i32, %c0_i32_0 : i32, i32
  }
  func.func @transform_15(%arg0: i32) -> (i32, i32) {
    %c0_i32 = arith.constant 0 : i32
    %c0_i32_0 = arith.constant 0 : i32
    %c0_i32_1 = arith.constant 0 : i32
    return %c0_i32, %c0_i32_0 : i32, i32
  }
  func.func @transform_16(%arg0: i32) -> (i32, i32) {
    %c0_i32 = arith.constant 0 : i32
    %c0_i32_0 = arith.constant 0 : i32
    %c0_i32_1 = arith.constant 0 : i32
    return %c0_i32, %c0_i32_0 : i32, i32
  }
  func.func @transform_17(%arg0: i32) -> (i32, i32, i32) {
    %c0_i32 = arith.constant 0 : i32
    %c0_i32_0 = arith.constant 0 : i32
    %c0_i32_1 = arith.constant 0 : i32
    return %arg0, %c0_i32, %c0_i32_0 : i32, i32, i32
  }
  func.func @transform_18(%arg0: i32) -> (i32, i32, i32, i32) {
    %c0_i32 = arith.constant 0 : i32
    %c0_i32_0 = arith.constant 0 : i32
    %c0_i32_1 = arith.constant 0 : i32
    %c0_i32_2 = arith.constant 0 : i32
    return %c0_i32, %arg0, %c0_i32_0, %c0_i32_1 : i32, i32, i32, i32
  }
}

</mosaic_0001>

<bundles_post_ra>
// kernel: tpu_custom_call.1
= control target key start
LH: loop header
LB: loop body
LE: loop exit
PB: predicated region body
PF: predicated region fallthrough
CT: control target
= control target key end

     0   :  { %s2328_s0 = inlined_call_operand.hbm [shape: f32[2,8,32], index: 0, kind: input, shape index: {}]   ;;  %s2329_s1 = inlined_call_operand.hbm [shape: f32[2,8,32], index: 1, kind: input, shape index: {}]   ;;  %s2330_s2 = inlined_call_operand.hbm [shape: f32[2,8,32], index: 2, kind: input, shape index: {}]   ;;  %s2331_s3 = inlined_call_operand.hbm [shape: f32[2,5,8,8], index: 3, kind: input, shape index: {}]   ;;  %s2332_s4 = inlined_call_operand.vmem [shape: f32[2,1,8], index: 4, kind: input, shape index: {}]   ;;  %s2333_s5 = inlined_call_operand.hbm [shape: f32[32,32], index: 5, kind: input, shape index: {}]   ;;  %s2334_s6 = inlined_call_operand.vmem [shape: f32[1,32], index: 6, kind: input, shape index: {}]   ;;  %s2335_s7 = inlined_call_operand.hbm [shape: f32[32,32], index: 7, kind: input, shape index: {}]   ;;  %s2336_s8 = inlined_call_operand.vmem [shape: f32[1,32], index: 8, kind: input, shape index: {}]   ;;  %s2337_s9 = inlined_call_operand.hbm [shape: f32[32,32], index: 9, kind: input, shape index: {}]   ;;  %s2338_s10 = inlined_call_operand.vmem [shape: f32[1,32], index: 10, kind: input, shape index: {}]   ;;  %s2339_s11 = inlined_call_operand.vmem [shape: f32[5,4], index: 11, kind: input, shape index: {}]   ;;  %s2340_s12 = inlined_call_operand.vmem [shape: f32[1,4], index: 12, kind: input, shape index: {}]   ;;  %s2341_s13 = inlined_call_operand.hbm [shape: f32[32,32], index: 13, kind: input, shape index: {}]   ;;  %s2342_s14 = inlined_call_operand.vmem [shape: f32[1,32], index: 14, kind: input, shape index: {}]   ;;  %s2343_s15 = inlined_call_operand.vmem [shape: f32[1,32], index: 15, kind: input, shape index: {}]   ;;  %s2344_s16 = inlined_call_operand.vmem [shape: f32[1,32], index: 16, kind: input, shape index: {}]   ;;  %s2345_s17 = inlined_call_operand.hbm [shape: f32[2,8,32], index: 17, kind: output, shape index: {0}]   ;;  %s2346_s18 = inlined_call_operand.hbm [shape: f32[4,2,8,8], index: 18, kind: output, shape index: {1}]  }
   0x1   :  { %2347 = sst [smem:[#allocation32_spill]] %s2328_s0 }
   0x2   :  { %2348 = sst [smem:[#allocation33_spill]] %s2329_s1 }
   0x3   :  { %2349 = sst [smem:[#allocation34_spill]] %s2330_s2 }
   0x4   :  { %24 = vsyncpa [#allocation3], 0 }
   0x5   :  { %25 = vsyncpa [#allocation7], 0 }
   0x6   :  { %26 = vsyncpa [#allocation10], 0 }
   0x7   :  { %27 = vsyncpa [#allocation13], 0 }
   0x8   :  { %28 = vsyncpa [#allocation5], 0 }
   0x9   :  { %29 = vsyncpa [#allocation17], 0 }
   0xa   :  { %30 = vsyncpa [#allocation19], 0 }
   0xb   :  { %31 = vsyncpa [#allocation4], 0 }
   0xc   :  { %32 = vsyncpa [#allocation22], 0  ;;  %s2350_s29 = sld [smem:[#allocation33_spill]]  ;;  %s1772_s0 = smov [#allocation6]  }
   0xd   :  { %s52_s19 = sshll.u32 %s1772_s0, 4  ;;  %s76_s21 = sshll.u32 %s2331_s3, 4  ;;  %s53_s19 = int_to_ptr.vmem [resolvable:$true] %s52_s19  ;;  %s77_s21 = int_to_ptr.hbm [resolvable:$true] %s76_s21 }
   0xe   :  { %s1773_s22 = smov 128   ;;  %s1774_s2 = smov 8  }
   0xf   :  { %s1775_s23 = smov [#allocation9]   ;;  %s106_s27 = sshll.u32 %s2335_s7, 4  ;;  %s107_s27 = int_to_ptr.hbm [resolvable:$true] %s106_s27 }
  0x10   :  { %s78_s24 = sshll.u32 %s1775_s23, 4  ;;  %s1776_s1 = smov [#allocation12]   ;;  %s79_s24 = int_to_ptr.vmem [resolvable:$true] %s78_s24 }
  0x11   :  { %84 = dma.hbm_to_vmem [thread:$0]  %s77_s21, 1280, %s79_s24, [#allocation10], %s1773_s22, %s1773_s22, %s1774_s2  }
  0x12   :  { %s50_s30 = sshll.u32 %s2350_s29, 4  ;;  %s2351_s29 = sld [smem:[#allocation32_spill]]  ;;  %s51_s30 = int_to_ptr.hbm [resolvable:$true] %s50_s30 }
  0x13   :  { %58 = dma.hbm_to_vmem [thread:$0]  %s51_s30, 256, %s53_s19, [#allocation7], %s1773_s22, %s1773_s22, %s1774_s2  }
  0x14   :  { %s108_s20 = sshll.u32 %s1776_s1, 4  ;;  %s1777_s30 = smov [#allocation2]   ;;  %s109_s20 = int_to_ptr.vmem [resolvable:$true] %s108_s20 }
  0x15   :  { %114 = dma.hbm_to_vmem [thread:$0]  %s107_s27, 512, %s109_s20, [#allocation13], %s1773_s22, %s1773_s22, %s1774_s2  }
  0x16   :  { %s39_s7 = sshll.u32 %s1777_s30, 4  ;;  %s2352_s25 = sld [smem:[#allocation34_spill]]  ;;  %s40_s7 = int_to_ptr.vmem [resolvable:$true] %s39_s7 }
  0x17   :  { %s91_s3 = sshll.u32 %s2333_s5, 4  ;;  %s1778_s28 = smov [#allocation8]   ;;  %s92_s3 = int_to_ptr.hbm [resolvable:$true] %s91_s3 }
  0x18   :  { %s37_s0 = sshll.u32 %s2351_s29, 4  ;;  %s65_s29 = sshll.u32 %s1778_s28, 4  ;;  %s38_s0 = int_to_ptr.hbm [resolvable:$true] %s37_s0  ;;  %s66_s29 = int_to_ptr.vmem [resolvable:$true] %s65_s29 }
  0x19   :  { %45 = dma.hbm_to_vmem [thread:$0]  %s38_s0, 256, %s40_s7, [#allocation3], %s1773_s22, %s1773_s22, %s1774_s2  }
  0x1a   :  { %s1779_s27 = smov [#allocation11]   ;;  %s121_s19 = sshll.u32 %s2337_s9, 4  ;;  %s122_s19 = int_to_ptr.hbm [resolvable:$true] %s121_s19 }
  0x1b   :  { %s93_s1 = sshll.u32 %s1779_s27, 4  ;;  %s137_s7 = sshll.u32 %s2339_s11, 4  ;;  %s94_s1 = int_to_ptr.vmem [resolvable:$true] %s93_s1  ;;  %s138_s7 = int_to_ptr.vmem [resolvable:$true] %s137_s7 }
  0x1c   :  { %s63_s26 = sshll.u32 %s2352_s25, 4  ;;  %s1780_s23 = smov [#allocation14]   ;;  %s64_s26 = int_to_ptr.hbm [resolvable:$true] %s63_s26 }
  0x1d   :  { %71 = dma.hbm_to_vmem [thread:$0]  %s64_s26, 256, %s66_s29, [#allocation7], %s1773_s22, %s1773_s22, %s1774_s2  }
  0x1e   :  { %99 = dma.hbm_to_vmem [thread:$0]  %s92_s3, 512, %s94_s1, [#allocation10], %s1773_s22, %s1773_s22, %s1774_s2  }
  0x1f   :  { %s123_s25 = sshll.u32 %s1780_s23, 4  ;;  %s1781_s26 = smov [#allocation15]   ;;  %s124_s25 = int_to_ptr.vmem [resolvable:$true] %s123_s25 }
  0x20   :  { %129 = dma.hbm_to_vmem [thread:$0]  %s122_s19, 512, %s124_s25, [#allocation13], %s1773_s22, %s1773_s22, %s1774_s2  }
  0x21   :  { %140 = dma.vmem_to_smem %s138_s7, 128, %s1781_s26, [#allocation5]  }
  0x22   :  { %s146_s24 = sshll.u32 %s2340_s12, 4  ;;  %s154_s29 = sshll.u32 %s2341_s13, 4  ;;  %s147_s24 = int_to_ptr.vmem [resolvable:$true] %s146_s24  ;;  %s155_s29 = int_to_ptr.hbm [resolvable:$true] %s154_s29 }
  0x23   :  { %s1782_s11 = smov [#allocation16]   ;;  %s1783_s27 = smov [#allocation18]  }
  0x24   :  { %149 = dma.vmem_to_smem %s147_s24, 16, %s1782_s11, [#allocation17]  }
  0x25   :  { %s156_s1 = sshll.u32 %s1783_s27, 4  ;;  %s157_s1 = int_to_ptr.vmem [resolvable:$true] %s156_s1 }
  0x26   :  { %162 = dma.hbm_to_vmem [thread:$0]  %s155_s29, 512, %s157_s1, [#allocation19], %s1773_s22, %s1773_s22, %s1774_s2  }
  0x27   :  { %1754 = dma.done.wait [#allocation3], 256  }
  0x28   :  { %1755 = vsyncadd [#allocation3], 4294967040 }
  0x29   :  { %1756 = dma.done.wait [#allocation7], 512  }
  0x2a   :  { %1757 = vsyncadd [#allocation7], 4294966784 }
  0x2b   :  { %1758 = dma.done.wait [#allocation10], 1792  }
  0x2c   :  { %1759 = vsyncadd [#allocation10], 4294965504 }
  0x2d   :  { %1760 = dma.done.wait [#allocation13], 1024  }
  0x2e   :  { %1761 = vsyncadd [#allocation13], 4294966272 }
  0x2f   :  { %1762 = dma.done.wait [#allocation5], 128  }
  0x30   :  { %1763 = vsyncadd [#allocation5], 4294967168 }
  0x31   :  { %1764 = dma.done.wait [#allocation17], 16  }
  0x32   :  { %1765 = vsyncadd [#allocation17], 4294967280 }
  0x33   :  { %1766 = dma.done.wait [#allocation19], 512  }
  0x34   :  { %1767 = vsyncadd [#allocation19], 4294966784 }
  0x35   :  { %209 = sfence }
  0x36   :  { %v257_v0 = vld [vmem:[#allocation12 + $0x18] sm:$0xff]  ;;  %v256_v1 = vld [vmem:[#allocation12 + $0x10] sm:$0xff]  ;;  %v255_v4 = vld [vmem:[#allocation12 + $0x8] sm:$0xff]  ;;  %vm224_vm0 = vcmask 261120   ;;  %vm328_vm1 = vcmask 64512   ;;  %s1784_s19 = smov 104  }
  0x37   :  { %v219_v2 = vld [vmem:[#allocation11 + $0x18] sm:$0xff]  ;;  %280 = vmatpush.msra.mxu1 %v257_v0  ;;  %1398 = vmatpush.msra.mxu2 %v257_v0  ;;  %v218_v3 = vld [vmem:[#allocation11 + $0x10] sm:$0xff]  ;;  %v254_v5 = vld [vmem:[#allocation12] sm:$0xff]  ;;  %s1785_s5 = smov 120   ;;  %s571_s0 = sld [smem:[#allocation16]]  ;;  %v1787_v60 = vmov 0  }
  0x38   :  { %243 = vmatpush.msra.mxu0 %v219_v2  ;;  %v217_v6 = vld [vmem:[#allocation11 + $0x8] sm:$0xff]  ;;  %v212_v7 = vld [vmem:[#allocation6] sm:$0xff]  ;;  %v213_v8 = vld [vmem:[#allocation6 + $0x8] sm:$0xff]  ;;  %s1366_s7 = sld [smem:[#allocation15 + $0x80]] }
  0x39   :  { %281 = vmatpush.msra.mxu1 %v256_v1  ;;  %1399 = vmatpush.msra.mxu2 %v256_v1  ;;  %v216_v9 = vld [vmem:[#allocation11] sm:$0xff]  ;;  %v211_v11 = vld [vmem:[#allocation2 + $0x8] sm:$0xff]  ;;  %v294_v16 = vld [vmem:[#allocation14 + $0x18] sm:$0xff]  ;;  %s1972_s23 = sld [smem:[#allocation15 + $0x100]] }
  0x3a   :  { %244 = vmatpush.msra.mxu0 %v218_v3  ;;  %v210_v10 = vld [vmem:[#allocation2] sm:$0xff]  ;;  %v293_v17 = vld [vmem:[#allocation14 + $0x10] sm:$0xff]  ;;  %v292_v20 = vld [vmem:[#allocation14 + $0x8] sm:$0xff]  ;;  %s1977_s25 = sld [smem:[#allocation15 + $0x180]] }
  0x3b   :  { %282 = vmatpush.msra.mxu1 %v255_v4  ;;  %1400 = vmatpush.msra.mxu2 %v255_v4  ;;  %v1428_v12 = vld [vmem:[%s2336_s8] ss:$0 sm:$0xff]  ;;  %v215_v27 = vld [vmem:[#allocation8 + $0x8] sm:$0xff]  ;;  %s567_s8 = sld [smem:[#allocation15]]  ;;  %v1970_v28 = vld [vmem:[#allocation9] sm:$0xff] }
  0x3c   :  { %245 = vmatpush.msra.mxu0 %v217_v6  ;;  %v1429_v13 = vld [vmem:[%s2334_s6] ss:$0 sm:$0xff]  ;;  %s1786_s6 = smov 112   ;;  %v1975_v31 = vld [vmem:[#allocation9 + $0x8] sm:$0xff]  ;;  %s1983_s26 = sld [smem:[#allocation15 + $0x200]]  ;;  %v1990_v43 = vld [vmem:[#allocation9 + $0x18] sm:$0xff] }
  0x3d   :  { %283 = vmatpush.msra.mxu1 %v254_v5  ;;  %1401 = vmatpush.msra.mxu2 %v254_v5  ;;  %v291_v21 = vld [vmem:[#allocation14] sm:$0xff]  ;;  %v572_v32 = vstv %s571_s0  ;;  %v1985_v39 = vld [vmem:[#allocation9 + $0x28] sm:$0xff]  ;;  %v2000_v52 = vld [vmem:[#allocation9 + $0x20] sm:$0xff]  ;;  %s2059_s29 = sld [smem:[#allocation16 + $0x2]] }
  0x3e   :  { %1346 = vmatmul.msk.f32.vlgmr.msra.gmra.mxu1 %vm224_vm0, %v212_v7  ;;  %1347 = vmatmul.msk.f32.vlgmr.msra.gmra.mxu2 %vm224_vm0, %v213_v8  ;;  %v214_v24 = vld [vmem:[#allocation8] sm:$0xff]  ;;  %v576_v33 = vstv %s1366_s7  ;;  %v2003_v54 = vld [vmem:[#allocation9 + $0x38] sm:$0xff]  ;;  %v2008_v59 = vld [vmem:[#allocation9 + $0x40] sm:$0xff]  ;;  %s2061_s11 = sld [smem:[#allocation15 + $0x82]] }
  0x3f   :  { %246 = vmatpush.msra.mxu0 %v216_v9  ;;  %317 = vmatpush.msrb.mxu2 %v294_v16  ;;  %v577_v35 = vmul.f32 %v576_v33, %v1975_v31  ;;  %v1980_v37 = vld [vmem:[#allocation9 + $0x10] sm:$0xff]  ;;  %v582_v38 = vstv %s1972_s23  ;;  %v2014_v3 = vld [vmem:[#allocation9 + $0x48] sm:$0xff]  ;;  %s2064_s27 = sld [smem:[#allocation15 + $0x102]] }
  0x40   :  { %1344 = vmatmul.msk.f32.vlgmr.msra.gmra.mxu0 %vm224_vm0, %v210_v10  ;;  %v583_v41 = vmul.f32 %v582_v38, %v1980_v37  ;;  %v588_v44 = vstv %s1977_s25  ;;  %v1993_v45 = vld [vmem:[#allocation9 + $0x30] sm:$0xff]  ;;  %v584_v58 = vmul.f32 %v582_v38, %v2003_v54  ;;  %s2069_s1 = sld [smem:[#allocation15 + $0x182]] }
  0x41   :  { %318 = vmatpush.msrb.mxu2 %v293_v17  ;;  %v568_v29 = vstv %s567_s8  ;;  %v703_v46 = vld [vmem:[%s2332_s4] sm:$0x1]  ;;  %v589_v48 = vmul.f32 %v588_v44, %v1990_v43  ;;  %v578_v50 = vmul.f32 %v576_v33, %v1993_v45  ;;  %v704_v63 = vld [vmem:[%s2332_s4 + $0x1] sm:$0x1]  ;;  %v590_v1 = vmul.f32 %v588_v44, %v2008_v59  ;;  %s2073_s12 = sld [smem:[#allocation15 + $0x202]] }
  0x42   :  { %v569_v30 = vmul.f32 %v568_v29, %v1970_v28  ;;  %v570_v42 = vmul.f32 %v568_v29, %v1985_v39  ;;  %v594_v53 = vstv %s1983_s26  ;;  %vm705_vm2 = vcmp.gt.f32.partialorder %v703_v46, 0.5  ;;  %v1430_v29 = vld [vmem:[%s2338_s10] ss:$0 sm:$0xff]  ;;  %s2057_s10 = sld [smem:[#allocation15 + $0x2]] }
  0x43   :  { %319 = vmatpush.msrb.mxu2 %v292_v20  ;;  %v595_v56 = vmul.f32 %v594_v53, %v2000_v52  ;;  %v707_v61 = vsel %vm705_vm2, 1, %v1787_v60  ;;  %vm706_vm3 = vcmp.gt.f32.partialorder %v704_v63, 0.5  ;;  %v596_v8 = vmul.f32 %v594_v53, %v2014_v3  ;;  %s2080_s13 = sld [smem:[#allocation15 + $0x1]] }
  0x44   :  { %v573_v34 = vadd.f32 %v572_v32, %v569_v30  ;;  %v574_v49 = vadd.f32 %v572_v32, %v570_v42  ;;  %v709_v2 = vperm.slane %v707_v61, 0  ;;  %v708_v10 = vsel %vm706_vm3, 1, %v1787_v60  ;;  %s2084_s20 = sld [smem:[#allocation16 + $0x1]] }
  0x45   :  { %320 = vmatpush.msrb.mxu2 %v291_v21  ;;  %v636_v53 = vstv %s2059_s29  ;;  %s2086_s30 = sld [smem:[#allocation15 + $0x81]]  ;;  %s1320_s29 = sshll.u32 %s2346_s18, 4  ;;  %s1321_s29 = int_to_ptr.hbm [resolvable:$true] %s1320_s29 }
  0x46   :  { %1348 = vmatmul.msk.f32.vlgmr.msrb.gmra.mxu2 %vm224_vm0, %v214_v24  ;;  %v579_v40 = vadd.f32 %v577_v35, %v573_v34  ;;  %v580_v57 = vadd.f32 %v578_v50, %v574_v49  ;;  %vm2019_vm4 = vcmp.eq.s32.totalorder %v709_v2, 1  ;;  %s2089_s8 = sld [smem:[#allocation15 + $0x101]] }
  0x47   :  { %s2092_s0 = sld [smem:[#allocation15 + $0x3]] }
  0x48   :  { %1345 = vmatmul.msk.f32.gmra.mxu0 %vm224_vm0, %v211_v11  ;;  %v585_v47 = vadd.f32 %v583_v41, %v579_v40  ;;  %v586_v0 = vadd.f32 %v584_v58, %v580_v57  ;;  %v632_v50 = vstv %s2057_s10  ;;  %v646_v58 = vstv %s2064_s27  ;;  %s2094_s7 = sld [smem:[#allocation15 + $0x181]] }
  0x49   :  { %v648_v63 = vmul.f32 %v646_v58, %v2003_v54  ;;  %s2097_s23 = sld [smem:[#allocation16 + $0x3]] }
  0x4a   :  { %v591_v55 = vadd.f32 %v589_v48, %v585_v47  ;;  %v592_v7 = vadd.f32 %v590_v1, %v586_v0  ;;  %v652_v0 = vstv %s2069_s1  ;;  %s2101_s25 = sld [smem:[#allocation15 + $0x83]] }
  0x4b   :  { %v654_v2 = vmul.f32 %v652_v0, %v2008_v59  ;;  %s2104_s26 = sld [smem:[#allocation15 + $0x201]] }
  0x4c   :  { %v597_v62 = vadd.f32 %v595_v56, %v591_v55  ;;  %v640_v55 = vstv %s2061_s11  ;;  %s2109_s9 = sld [smem:[#allocation15 + $0x103]] }
  0x4d   :  { %v642_v57 = vmul.f32 %v640_v55, %v1993_v45  ;;  %s2119_s21 = sld [smem:[#allocation15 + $0x183]] }
  0x4e   :  { %1349 = vmatmul.msk.f32.gmra.mxu2 %vm224_vm0, %v215_v27  ;;  %v695_v6 = vmax.f32 %v597_v62, 0.0  ;;  %s2127_s24 = sld [smem:[#allocation15 + $0x203]] }
  0x50   :  { %v721_v11 = vsel %vm2019_vm4, 0.0, %v695_v6 }
  0x51   :  { %v729_v16 = vmax.f32 %v721_v11, 1e-06  ;;  %v604_v11 = vstv %s2084_s20 }
  0x53   :  { %1434 = vlog2.f32 %v729_v16  ;;  %v614_v16 = vstv %s2089_s8 }
  0xbb   :  { %v285_v14 = vpop.f32.mrf.mxu1 }
  0xbc   :  { %v286_v15 = vadd.f32 %v1428_v12, %v285_v14 }
  0xbd   :  { %v248_v18 = vpop.f32.mrf.mxu0 }
  0xbe   :  { %495 = vrot.lane.b32.xlu1 %v286_v15, %s1784_s19  ;;  %383 = vrot.lane.b32.xlu0 %v286_v15, %s1785_s5  ;;  %v249_v19 = vadd.f32 %v1429_v13, %v248_v18 }
  0xbf   :  { %1350 = vmatpush.xpose.msk.msra.mxu3 %vm328_vm1, %v286_v15 }
  0xc1   :  { %v288_v22 = vpop.f32.mrf.mxu2 }
  0xc2   :  { %v289_v23 = vadd.f32 %v1428_v12, %v288_v22  ;;  %1351 = vmatmul.msk.f32.vlgmr.msra.gmra.mxu3 %vm328_vm1, %v249_v19  ;;  %v598_v12 = vadd.f32 %v596_v8, %v592_v7  ;;  %v600_v7 = vstv %s2080_s13 }
  0xc4   :  { %467 = vrot.lane.b32.xlu2 %v289_v23, %s1786_s6  ;;  %1352 = vmatpush.xpose.msk.msrb.mxu3 %vm328_vm1, %v289_v23  ;;  %v696_v17 = vmax.f32 %v598_v12, 0.0  ;;  %v608_v12 = vstv %s2086_s30  ;;  %s1307_s30 = sshll.u32 %s2345_s17, 4  ;;  %s1308_s30 = int_to_ptr.hbm [resolvable:$true] %s1307_s30 }
  0xc5   :  { %v251_v25 = vpop.f32.mrf.mxu0 }
  0xc6   :  { %v252_v26 = vadd.f32 %v1429_v13, %v251_v25  ;;  %493 = vrot.lane.b32.xlu1 %v249_v19, %s1784_s19  ;;  %381 = vrot.lane.b32.xlu0 %v249_v19, %s1785_s5  ;;  %v710_v13 = vperm.slane %v708_v10, 0  ;;  %v601_v10 = vmul.f32 %v600_v7, %v1970_v28 }
  0xc8   :  { %vm2026_vm5 = vcmp.eq.s32.totalorder %v710_v13, 1 }
  0xc9   :  { %v322_v35 = vpop.f32.mrf.mxu2 }
  0xca   :  { %1353 = vmatmul.msk.f32.vlgmr.msrb.gmra.mxu3 %vm328_vm1, %v252_v26  ;;  %v2045_v38 = vadd.f32 %v1430_v29, %v322_v35 }
  0xcc   :  { %465 = vrot.lane.b32.xlu2 %v252_v26, %s1786_s6 }
  0xce   :  { %411 = vrot.lane.b32.xlu1 %v289_v23, %s1785_s5  ;;  %439 = vrot.lane.b32.xlu0 %v286_v15, %s1786_s6 }
  0xd1   :  { %v325_v60 = vpop.f32.mrf.mxu2 }
  0xd2   :  { %v2075_v61 = vadd.f32 %v1430_v29, %v325_v60  ;;  %v672_v29 = vstv %s2101_s25 }
  0xd4   :  { %437 = vrot.lane.b32.xlu2 %v249_v19, %s1786_s6  ;;  %v722_v19 = vsel %vm2026_vm5, 0.0, %v696_v17  ;;  %v633_v17 = vmul.f32 %v632_v50, %v1970_v28 }
  0xd5   :  { %v730_v22 = vmax.f32 %v722_v19, 1e-06  ;;  %v664_v19 = vstv %s2092_s0 }
  0xd6   :  { %523 = vrot.lane.b32.xlu1 %v289_v23, %s1784_s19  ;;  %409 = vrot.lane.b32.xlu0 %v252_v26, %s1785_s5  ;;  %v1435_v23 = vpop.eup %1434  ;;  %v666_v60 = vmul.f32 %v664_v19, %v1985_v39 }
  0xd7   :  { %1436 = vlog2.f32 %v730_v22  ;;  %v615_v22 = vmul.f32 %v614_v16, %v1980_v37 }
  0xdc   :  { %521 = vrot.lane.b32.xlu2 %v252_v26, %s1784_s19  ;;  %v738_v26 = vmul.f32 0.6931472, %v1435_v23  ;;  %v620_v23 = vstv %s2094_s7 }
  0xdd   :  { %v621_v35 = vmul.f32 %v620_v23, %v1990_v43 }
 0x11e   :  { %v468_v36 = vpop.permute.xlu2 %467 }
 0x11f   :  { %1360 = vmatpush.xpose.msk.msra.mxu2 %vm328_vm1, %v468_v36  ;;  %v1437_v36 = vpop.eup %1436 }
 0x120   :  { %v740_v42 = vmul.f32 0.6931472, %v1437_v36 }
 0x123   :  { %1002 = vmatpush.msrb.mxu2 %v2075_v61 }
 0x126   :  { %v466_v51 = vpop.permute.xlu2 %465 }
 0x127   :  { %1361 = vmatmul.msk.f32.vlgmr.msra.gmra.mxu2 %vm328_vm1, %v466_v51  ;;  %v634_v51 = vmul.f32 %v632_v50, %v1985_v39 }
 0x129   :  { %v638_v56 = vadd.f32 %v636_v53, %v634_v51 }
 0x12b   :  { %v644_v62 = vadd.f32 %v642_v57, %v638_v56  ;;  %v684_v56 = vstv %s2119_s21 }
 0x12d   :  { %v650_v1 = vadd.f32 %v648_v63, %v644_v62 }
 0x12e   :  { %v438_v24 = vpop.permute.xlu2 %437 }
 0x130   :  { %v496_v4 = vpop.permute.xlu1 %495  ;;  %v384_v5 = vpop.permute.xlu0 %383 }
 0x131   :  { %1354 = vmatpush.xpose.msk.msra.mxu3 %vm328_vm1, %v384_v5  ;;  %v656_v5 = vadd.f32 %v654_v2, %v650_v1  ;;  %v685_v1 = vmul.f32 %v684_v56, %v1990_v43 }
 0x135   :  { %1362 = vmatpush.xpose.msk.msrb.mxu3 %vm328_vm1, %v496_v4  ;;  %v658_v4 = vstv %s2073_s12 }
 0x136   :  { %v522_v46 = vpop.permute.xlu2 %521  ;;  %v660_v6 = vmul.f32 %v658_v4, %v2014_v3 }
 0x138   :  { %v494_v14 = vpop.permute.xlu1 %493  ;;  %v382_v15 = vpop.permute.xlu0 %381  ;;  %v662_v8 = vadd.f32 %v660_v6, %v656_v5  ;;  %v659_v6 = vmul.f32 %v658_v4, %v2000_v52 }
 0x139   :  { %1355 = vmatmul.msk.f32.vlgmr.msra.gmra.mxu3 %vm328_vm1, %v382_v15  ;;  %v609_v15 = vmul.f32 %v608_v12, %v1975_v31 }
 0x13a   :  { %v700_v13 = vmax.f32 %v662_v8, 0.0 }
 0x140   :  { %v412_v20 = vpop.permute.xlu1 %411  ;;  %v440_v21 = vpop.permute.xlu0 %439 }
 0x141   :  { %1358 = vmatpush.xpose.msk.msrb.mxu1 %vm328_vm1, %v440_v21  ;;  %1363 = vmatmul.msk.f32.vlgmr.msrb.gmra.mxu3 %vm328_vm1, %v494_v14  ;;  %v605_v14 = vadd.f32 %v604_v11, %v601_v10 }
 0x142   :  { %1356 = vmatpush.xpose.msk.msrb.mxu0 %vm328_vm1, %v412_v20  ;;  %v726_v20 = vsel %vm2026_vm5, 0.0, %v700_v13 }
 0x143   :  { %v611_v21 = vadd.f32 %v609_v15, %v605_v14 }
 0x144   :  { %1359 = vmatmul.msk.f32.vlgmr.msrb.gmra.mxu1 %vm328_vm1, %v438_v24  ;;  %v665_v24 = vmul.f32 %v664_v19, %v1970_v28  ;;  %v647_v28 = vmul.f32 %v646_v58, %v1980_v37  ;;  %v616_v58 = vmul.f32 %v614_v16, %v2003_v54 }
 0x145   :  { %v352_v25 = vpop.f32.mrf.mxu3  ;;  %979 = vmatpush.msra.mxu1 %v2045_v38 }
 0x146   :  { %v549_v27 = vmul.f32 0.35355338, %v352_v25  ;;  %v637_v25 = vadd.f32 %v636_v53, %v633_v17 }
 0x148   :  { %v713_v30 = vsel %vm2019_vm4, -inf, %v549_v27  ;;  %v524_v32 = vpop.permute.xlu1 %523  ;;  %v410_v33 = vpop.permute.xlu0 %409  ;;  %v668_v27 = vstv %s2097_s23 }
 0x149   :  { %1357 = vmatmul.msk.f32.vlgmr.msrb.gmra.mxu0 %vm328_vm1, %v410_v33  ;;  %v2042_v34 = vadd.f32 %v738_v26, %v713_v30  ;;  %v641_v26 = vmul.f32 %v640_v55, %v1975_v31  ;;  %v602_v30 = vmul.f32 %v600_v7, %v1985_v39  ;;  %v617_v33 = vadd.f32 %v615_v22, %v611_v21 }
 0x14a   :  { %1364 = vmatpush.xpose.msk.msra.mxu0 %vm328_vm1, %v524_v32  ;;  %v734_v32 = vmax.f32 %v726_v20, 1e-06  ;;  %v669_v36 = vadd.f32 %v668_v27, %v665_v24  ;;  %v690_v7 = vstv %s2127_s24  ;;  %v670_v10 = vadd.f32 %v668_v27, %v666_v60 }
 0x14b   :  { %v761_v40 = vsel %vm328_vm1, %v2042_v34, -inf  ;;  %v691_v13 = vmul.f32 %v690_v7, %v2000_v52 }
 0x14c   :  { %762 = vmax.xlane.f32.xlu1 %v761_v40  ;;  %v673_v40 = vmul.f32 %v672_v29, %v1975_v31  ;;  %1438 = vlog2.f32 %v734_v32  ;;  %v653_v31 = vmul.f32 %v652_v0, %v1990_v43  ;;  %v674_v0 = vmul.f32 %v672_v29, %v1993_v45 }
 0x14d   :  { %v378_v41 = vpop.f32.mrf.mxu3 }
 0x14e   :  { %v550_v44 = vmul.f32 0.35355338, %v378_v41  ;;  %v626_v41 = vstv %s2104_s26  ;;  %v675_v51 = vadd.f32 %v673_v40, %v669_v36  ;;  %v676_v17 = vadd.f32 %v674_v0, %v670_v10 }
 0x14f   :  { %v627_v50 = vmul.f32 %v626_v41, %v2000_v52  ;;  %v628_v43 = vmul.f32 %v626_v41, %v2014_v3 }
 0x150   :  { %v714_v47 = vsel %vm2026_vm5, -inf, %v550_v44  ;;  %v678_v44 = vstv %s2109_s9 }
 0x151   :  { %1365 = vmatmul.msk.f32.vlgmr.msra.gmra.mxu0 %vm328_vm1, %v522_v46  ;;  %v2053_v48 = vadd.f32 %v740_v42, %v714_v47  ;;  %v643_v42 = vadd.f32 %v641_v26, %v637_v25  ;;  %v606_v46 = vadd.f32 %v604_v11, %v602_v30  ;;  %v610_v47 = vmul.f32 %v608_v12, %v1993_v45 }
 0x152   :  { %v679_v53 = vmul.f32 %v678_v44, %v1980_v37  ;;  %v1439_v2 = vpop.eup %1438  ;;  %v622_v37 = vmul.f32 %v620_v23, %v2008_v59  ;;  %v680_v4 = vmul.f32 %v678_v44, %v2003_v54  ;;  %v686_v25 = vmul.f32 %v684_v56, %v2008_v59 }
 0x153   :  { %v764_v49 = vsel %vm328_vm1, %v2053_v48, -inf  ;;  %v649_v55 = vadd.f32 %v647_v28, %v643_v42  ;;  %v612_v57 = vadd.f32 %v610_v47, %v606_v46  ;;  %v748_v39 = vmul.f32 0.6931472, %v1439_v2 }
 0x154   :  { %765 = vmax.xlane.f32.xlu2 %v764_v49  ;;  %v623_v49 = vadd.f32 %v621_v35, %v617_v33  ;;  %v681_v63 = vadd.f32 %v679_v53, %v675_v51  ;;  %v682_v24 = vadd.f32 %v680_v4, %v676_v17  ;;  %v692_v33 = vmul.f32 %v690_v7, %v2014_v3 }
 0x155   :  { %v655_v5 = vadd.f32 %v653_v31, %v649_v55  ;;  %v618_v8 = vadd.f32 %v616_v58, %v612_v57 }
 0x156   :  { %v629_v62 = vadd.f32 %v627_v50, %v623_v49  ;;  %v687_v12 = vadd.f32 %v685_v1, %v681_v63  ;;  %v688_v32 = vadd.f32 %v686_v25, %v682_v24 }
 0x157   :  { %v661_v14 = vadd.f32 %v659_v6, %v655_v5  ;;  %v624_v16 = vadd.f32 %v622_v37, %v618_v8 }
 0x158   :  { %v697_v11 = vmax.f32 %v629_v62, 0.0  ;;  %v693_v21 = vadd.f32 %v691_v13, %v687_v12  ;;  %v694_v40 = vadd.f32 %v692_v33, %v688_v32 }
 0x159   :  { %v699_v22 = vmax.f32 %v661_v14, 0.0  ;;  %v630_v52 = vadd.f32 %v628_v43, %v624_v16 }
 0x15a   :  { %v723_v20 = vsel %vm2019_vm4, 0.0, %v697_v11  ;;  %v701_v54 = vmax.f32 %v693_v21, 0.0  ;;  %v702_v44 = vmax.f32 %v694_v40, 0.0 }
 0x15b   :  { %v731_v26 = vmax.f32 %v723_v20, 1e-06  ;;  %v725_v29 = vsel %vm2019_vm4, 0.0, %v699_v22  ;;  %v698_v30 = vmax.f32 %v630_v52, 0.0 }
 0x15c   :  { %v727_v35 = vsel %vm2019_vm4, 0.0, %v701_v54  ;;  %v733_v36 = vmax.f32 %v725_v29, 1e-06  ;;  %v728_v3 = vsel %vm2026_vm5, 0.0, %v702_v44 }
 0x15d   :  { %1440 = vlog2.f32 %v731_v26  ;;  %v724_v59 = vsel %vm2026_vm5, 0.0, %v698_v30  ;;  %v735_v41 = vmax.f32 %v727_v35, 1e-06  ;;  %v736_v56 = vmax.f32 %v728_v3, 1e-06 }
 0x15e   :  { %1442 = vlog2.f32 %v733_v36  ;;  %v732_v28 = vmax.f32 %v724_v59, 1e-06 }
 0x15f   :  { %1444 = vlog2.f32 %v735_v41 }
 0x160   :  { %1446 = vlog2.f32 %v732_v28 }
 0x161   :  { %1448 = vlog2.f32 %v736_v56 }
 0x163   :  { %v1441_v42 = vpop.eup %1440 }
 0x164   :  { %v742_v47 = vmul.f32 0.6931472, %v1441_v42  ;;  %v1443_v50 = vpop.eup %1442 }
 0x165   :  { %v1445_v55 = vpop.eup %1444  ;;  %v746_v60 = vmul.f32 0.6931472, %v1443_v50 }
 0x166   :  { %v1447_v62 = vpop.eup %1446  ;;  %v750_v2 = vmul.f32 0.6931472, %v1445_v55 }
 0x167   :  { %v744_v8 = vmul.f32 0.6931472, %v1447_v62 }
 0x1aa   :  { %v490_v15 = vpop.f32.mrf.mxu2 }
 0x1ab   :  { %v554_v19 = vmul.f32 0.35355338, %v490_v15  ;;  %v1449_v15 = vpop.eup %1448 }
 0x1ac   :  { %v752_v17 = vmul.f32 0.6931472, %v1449_v15 }
 0x1ad   :  { %v718_v45 = vsel %vm2026_vm5, -inf, %v554_v19 }
 0x1ae   :  { %v2148_v23 = vadd.f32 %v748_v39, %v718_v45 }
 0x1b0   :  { %v776_v27 = vsel %vm328_vm1, %v2148_v23, -inf }
 0x1b1   :  { %777 = vmax.xlane.f32.xlu2 %v776_v27 }
 0x1bc   :  { %v406_v46 = vpop.f32.mrf.mxu3 }
 0x1bd   :  { %v551_v49 = vmul.f32 0.35355338, %v406_v46 }
 0x1bf   :  { %v715_v51 = vsel %vm2019_vm4, -inf, %v551_v49  ;;  %v763_v52 = vpop.xlane.xlu1 %762 }
 0x1c0   :  { %v755_v53 = vadd.f32 %v742_v47, %v715_v51  ;;  %v785_v18 = vsub.f32 %v2042_v34, %v763_v52 }
 0x1c1   :  { %v462_v31 = vpop.f32.mrf.mxu1 }
 0x1c2   :  { %v553_v57 = vmul.f32 0.35355338, %v462_v31  ;;  %v767_v58 = vsel %vm328_vm1, %v755_v53, -inf  ;;  %v793_v24 = vmul.f32 1.442695, %v785_v18 }
 0x1c3   :  { %768 = vmax.xlane.f32.xlu0 %v767_v58 }
 0x1c4   :  { %v717_v63 = vsel %vm2019_vm4, -inf, %v553_v57  ;;  %v518_v1 = vpop.f32.mrf.mxu3 }
 0x1c5   :  { %v555_v5 = vmul.f32 0.35355338, %v518_v1  ;;  %v757_v7 = vadd.f32 %v746_v60, %v717_v63 }
 0x1c6   :  { %v434_v6 = vpop.f32.mrf.mxu0 }
 0x1c7   :  { %v719_v37 = vsel %vm2019_vm4, -inf, %v555_v5  ;;  %v552_v10 = vmul.f32 0.35355338, %v434_v6  ;;  %v766_v0 = vpop.xlane.xlu2 %765  ;;  %v773_v13 = vsel %vm328_vm1, %v757_v7, -inf }
 0x1c8   :  { %v759_v11 = vadd.f32 %v750_v2, %v719_v37  ;;  %v786_v16 = vsub.f32 %v2053_v48, %v766_v0 }
 0x1c9   :  { %v716_v12 = vsel %vm2026_vm5, -inf, %v552_v10 }
 0x1ca   :  { %v779_v39 = vsel %vm328_vm1, %v759_v11, -inf  ;;  %v756_v14 = vadd.f32 %v744_v8, %v716_v12  ;;  %v795_v4 = vmul.f32 1.442695, %v786_v16 }
 0x1cb   :  { %774 = vmax.xlane.f32.xlu0 %v773_v13  ;;  %780 = vmax.xlane.f32.xlu2 %v779_v39 }
 0x1cc   :  { %v770_v43 = vsel %vm328_vm1, %v756_v14, -inf  ;;  %1450 = vpow2.f32 %v795_v4 }
 0x1cd   :  { %771 = vmax.xlane.f32.xlu1 %v770_v43  ;;  %1452 = vpow2.f32 %v793_v24 }
 0x1ce   :  { %v546_v9 = vpop.f32.mrf.mxu0 }
 0x1cf   :  { %v556_v19 = vmul.f32 0.35355338, %v546_v9 }
 0x1d1   :  { %v720_v20 = vsel %vm2026_vm5, -inf, %v556_v19 }
 0x1d2   :  { %v760_v21 = vadd.f32 %v752_v17, %v720_v20  ;;  %v2178_v22 = vpop.eup %1450 }
 0x1d3   :  { %v812_v48 = vsel %vm328_vm1, %v2178_v22, 0.0  ;;  %v2187_v25 = vpop.eup %1452 }
 0x1d4   :  { %v782_v45 = vsel %vm328_vm1, %v760_v21, -inf  ;;  %v809_v26 = vsel %vm328_vm1, %v2187_v25, 0.0 }
 0x1d5   :  { %783 = vmax.xlane.f32.xlu0 %v782_v45 }
 0x1dd   :  { %813 = vadd.xlane.f32.xlu0 %v812_v48 }
 0x1e3   :  { %1008 = vrot.lane.b32.xlu2 %v2045_v38, %s1785_s5 }
 0x1e6   :  { %1113 = vrot.lane.b32.xlu1 %v2045_v38, %s1784_s19 }
 0x20c   :  { %810 = vadd.xlane.f32.xlu2 %v809_v26 }
 0x224   :  { %v778_v27 = vpop.xlane.xlu2 %777 }
 0x225   :  { %v790_v30 = vsub.f32 %v2148_v23, %v778_v27 }
 0x227   :  { %v803_v33 = vmul.f32 1.442695, %v790_v30 }
 0x236   :  { %v769_v54 = vpop.xlane.xlu0 %768 }
 0x237   :  { %v787_v29 = vsub.f32 %v755_v53, %v769_v54 }
 0x239   :  { %v797_v32 = vmul.f32 1.442695, %v787_v29 }
 0x23b   :  { %1454 = vpow2.f32 %v797_v32 }
 0x23c   :  { %1456 = vpow2.f32 %v803_v33 }
 0x23e   :  { %v775_v35 = vpop.xlane.xlu0 %774  ;;  %v781_v36 = vpop.xlane.xlu2 %780 }
 0x23f   :  { %v789_v59 = vsub.f32 %v757_v7, %v775_v35  ;;  %v791_v42 = vsub.f32 %v759_v11, %v781_v36 }
 0x240   :  { %v772_v34 = vpop.xlane.xlu1 %771 }
 0x241   :  { %v2192_v40 = vpop.eup %1454  ;;  %v801_v41 = vmul.f32 1.442695, %v789_v59  ;;  %v788_v28 = vsub.f32 %v756_v14, %v772_v34  ;;  %v805_v23 = vmul.f32 1.442695, %v791_v42  ;;  %v1423_v14 = vpack.i.bf16 %v2075_v61, %v2045_v38 }
 0x242   :  { %v815_v44 = vsel %vm328_vm1, %v2192_v40, 0.0  ;;  %v2196_v49 = vpop.eup %1456 }
 0x243   :  { %1458 = vpow2.f32 %v801_v41  ;;  %v799_v46 = vmul.f32 1.442695, %v788_v28  ;;  %816 = vadd.xlane.f32.xlu1 %v815_v44  ;;  %v824_v53 = vsel %vm328_vm1, %v2196_v49, 0.0 }
 0x245   :  { %1460 = vpow2.f32 %v799_v46 }
 0x246   :  { %v1009_v47 = vpop.permute.xlu2 %1008  ;;  %1462 = vpow2.f32 %v805_v23 }
 0x247   :  { %1029 = vmatpush.msra.mxu3 %v1009_v47 }
 0x248   :  { %v784_v3 = vpop.xlane.xlu0 %783 }
 0x249   :  { %v2198_v50 = vpop.eup %1458  ;;  %v792_v51 = vsub.f32 %v760_v21, %v784_v3 }
 0x24a   :  { %v821_v55 = vsel %vm328_vm1, %v2198_v50, 0.0 }
 0x24b   :  { %v2204_v31 = vpop.eup %1460  ;;  %v807_v56 = vmul.f32 1.442695, %v792_v51  ;;  %825 = vadd.xlane.f32.xlu1 %v824_v53  ;;  %822 = vadd.xlane.f32.xlu2 %v821_v55  ;;  %v1200_v51 = vld [vmem:[#allocation18 + $0x18] sm:$0xff] }
 0x24c   :  { %v818_v57 = vsel %vm328_vm1, %v2204_v31, 0.0  ;;  %v2208_v58 = vpop.eup %1462 }
 0x24d   :  { %1464 = vpow2.f32 %v807_v56  ;;  %819 = vadd.xlane.f32.xlu0 %v818_v57  ;;  %v827_v62 = vsel %vm328_vm1, %v2208_v58, 0.0 }
 0x250   :  { %v814_v60 = vpop.xlane.xlu0 %813 }
 0x251   :  { %1466 = vrcp.f32 %v814_v60  ;;  %v859_v8 = vand.u32 2147483648, %v814_v60  ;;  %v857_v10 = vand.u32 2147483647, %v814_v60  ;;  %vm853_vm7 = vweird.f32 %v814_v60 }
 0x253   :  { %v2212_v63 = vpop.eup %1464  ;;  %828 = vadd.xlane.f32.xlu1 %v827_v62  ;;  %v860_v11 = vor.u32 1.1754944e-38, %v859_v8  ;;  %vm858_vm9 = vcmp.eq.f32.partialorder %v857_v10, 8.507059e+37 }
 0x254   :  { %v830_v1 = vsel %vm328_vm1, %v2212_v63, 0.0 }
 0x255   :  { %831 = vadd.xlane.f32.xlu0 %v830_v1 }
 0x257   :  { %v1467_v2 = vpop.eup %1466 }
 0x258   :  { %v849_v5 = vmul.f32 %v1467_v2, %v814_v60  ;;  %v1114_v6 = vpop.permute.xlu1 %1113  ;;  %vm854_vm6 = vweird.f32 %v1467_v2 }
 0x259   :  { %1134 = vmatpush.msrb.mxu3 %v1114_v6  ;;  %vm855_vm8 = vmor %vm853_vm7, %vm854_vm6 }
 0x25a   :  { %v850_v7 = vsub.f32 1.0, %v849_v5 }
 0x25c   :  { %v851_v37 = vmul.f32 %v1467_v2, %v850_v7 }
 0x25e   :  { %v852_v0 = vadd.f32 %v1467_v2, %v851_v37 }
 0x260   :  { %v856_v12 = vsel %vm855_vm8, %v1467_v2, %v852_v0 }
 0x261   :  { %v861_v13 = vsel %vm858_vm9, %v860_v11, %v856_v12 }
 0x262   :  { %v862_v39 = vmul.f32 %v2178_v22, %v861_v13 }
 0x263   :  { %1035 = vrot.lane.b32.xlu2 %v2075_v61, %s1785_s5  ;;  %s1789_s5 = smov 24  }
 0x264   :  { %954 = vst.msk [vmem:[#allocation21 + $0x8] sm:$0xff] %vm328_vm1, %v862_v39  ;;  %1389 = vmatmul.msk.f32.vlgmr.msrb.gmra.mxu2 %vm328_vm1, %v862_v39 }
 0x269   :  { %1424 = vrot.lane.b32.xlu0 %v1423_v14, %s1786_s6 }
 0x26c   :  { %1139 = vrot.lane.b32.xlu1 %v2075_v61, %s1784_s19  ;;  %s1788_s19 = smov 16  }
 0x27f   :  { %v811_v15 = vpop.xlane.xlu2 %810 }
 0x280   :  { %1468 = vrcp.f32 %v811_v15  ;;  %v844_v17 = vand.u32 2147483648, %v811_v15  ;;  %v842_v19 = vand.u32 2147483647, %v811_v15  ;;  %vm838_vm11 = vweird.f32 %v811_v15 }
 0x282   :  { %v845_v21 = vor.u32 1.1754944e-38, %v844_v17  ;;  %vm843_vm13 = vcmp.eq.f32.partialorder %v842_v19, 8.507059e+37 }
 0x286   :  { %v1469_v16 = vpop.eup %1468 }
 0x287   :  { %v834_v43 = vmul.f32 %v1469_v16, %v811_v15  ;;  %vm839_vm10 = vweird.f32 %v1469_v16 }
 0x288   :  { %vm840_vm12 = vmor %vm838_vm11, %vm839_vm10 }
 0x289   :  { %v835_v9 = vsub.f32 1.0, %v834_v43 }
 0x28b   :  { %v836_v4 = vmul.f32 %v1469_v16, %v835_v9 }
 0x28d   :  { %v837_v20 = vadd.f32 %v1469_v16, %v836_v4 }
 0x28f   :  { %v841_v45 = vsel %vm840_vm12, %v1469_v16, %v837_v20 }
 0x290   :  { %v846_v38 = vsel %vm843_vm13, %v845_v21, %v841_v45 }
 0x291   :  { %v847_v22 = vmul.f32 %v2187_v25, %v846_v38 }
 0x293   :  { %953 = vst.msk [vmem:[#allocation21] sm:$0xff] %vm328_vm1, %v847_v22  ;;  %1388 = vmatmul.msk.f32.vlgmr.msra.gmra.mxu1 %vm328_vm1, %v847_v22 }
 0x2b6   :  { %v817_v61 = vpop.xlane.xlu1 %816 }
 0x2b7   :  { %1470 = vrcp.f32 %v817_v61  ;;  %v872_v54 = vand.u32 2147483647, %v817_v61  ;;  %v874_v25 = vand.u32 2147483648, %v817_v61  ;;  %vm868_vm15 = vweird.f32 %v817_v61 }
 0x2b9   :  { %vm2236_vm3 = vcmp.eq.f32.partialorder %v872_v54, 8.507059e+37  ;;  %v875_v41 = vor.u32 1.1754944e-38, %v874_v25 }
 0x2bd   :  { %v1471_v48 = vpop.eup %1470 }
 0x2be   :  { %v864_v52 = vmul.f32 %v1471_v48, %v817_v61  ;;  %v826_v18 = vpop.xlane.xlu1 %825  ;;  %v823_v24 = vpop.xlane.xlu2 %822  ;;  %vm869_vm14 = vweird.f32 %v1471_v48 }
 0x2bf   :  { %1472 = vrcp.f32 %v826_v18  ;;  %v917_v32 = vand.u32 2147483647, %v826_v18  ;;  %vm2232_vm2 = vmor %vm868_vm15, %vm869_vm14  ;;  %vm913_vm4 = vweird.f32 %v826_v18  ;;  %v919_v23 = vand.u32 2147483648, %v826_v18 }
 0x2c0   :  { %v865_v26 = vsub.f32 1.0, %v864_v52  ;;  %1474 = vrcp.f32 %v823_v24  ;;  %v2229_v27 = vpop.xlane.xlu0 %819  ;;  %vm898_vm5 = vweird.f32 %v823_v24  ;;  %v902_v53 = vand.u32 2147483647, %v823_v24 }
 0x2c1   :  { %1476 = vrcp.f32 %v2229_v27  ;;  %vm2245_vm6 = vcmp.eq.f32.partialorder %v917_v32, 8.507059e+37  ;;  %v904_v62 = vand.u32 2147483648, %v823_v24  ;;  %v887_v5 = vand.u32 2147483647, %v2229_v27 }
 0x2c2   :  { %v866_v29 = vmul.f32 %v1471_v48, %v865_v26  ;;  %v920_v6 = vor.u32 1.1754944e-38, %v919_v23  ;;  %v889_v8 = vand.u32 2147483648, %v2229_v27  ;;  %vm2259_vm11 = vcmp.eq.f32.partialorder %v902_v53, 8.507059e+37  ;;  %v1199_v53 = vld [vmem:[#allocation18 + $0x10] sm:$0xff] }
 0x2c3   :  { %v905_v39 = vor.u32 1.1754944e-38, %v904_v62  ;;  %vm883_vm12 = vweird.f32 %v2229_v27  ;;  %vm888_vm14 = vcmp.eq.f32.partialorder %v887_v5, 8.507059e+37 }
 0x2c4   :  { %v867_v30 = vadd.f32 %v1471_v48, %v866_v29  ;;  %v890_v17 = vor.u32 1.1754944e-38, %v889_v8 }
 0x2c5   :  { %v1473_v33 = vpop.eup %1472 }
 0x2c6   :  { %v1475_v59 = vpop.eup %1474  ;;  %v871_v34 = vsel %vm2232_vm2, %v1471_v48, %v867_v30  ;;  %v909_v42 = vmul.f32 %v1473_v33, %v826_v18  ;;  %v2242_v28 = vpop.xlane.xlu1 %828  ;;  %vm914_vm7 = vweird.f32 %v1473_v33 }
 0x2c7   :  { %v1036_v44 = vpop.permute.xlu2 %1035  ;;  %v1477_v46 = vpop.eup %1476  ;;  %v894_v47 = vmul.f32 %v1475_v59, %v823_v24  ;;  %1478 = vrcp.f32 %v2242_v28  ;;  %v876_v57 = vsel %vm2236_vm3, %v875_v41, %v871_v34  ;;  %vm899_vm8 = vweird.f32 %v1475_v59  ;;  %vm915_vm10 = vmor %vm913_vm4, %vm914_vm7 }
 0x2c8   :  { %1056 = vmatpush.msrb.mxu0 %v1036_v44  ;;  %v910_v3 = vsub.f32 1.0, %v909_v42  ;;  %v879_v55 = vmul.f32 %v1477_v46, %v2229_v27  ;;  %v2250_v56 = vpop.xlane.xlu0 %831  ;;  %vm884_vm9 = vweird.f32 %v1477_v46  ;;  %v877_v0 = vmul.f32 %v2192_v40, %v876_v57  ;;  %vm900_vm13 = vmor %vm898_vm5, %vm899_vm8 }
 0x2c9   :  { %v895_v60 = vsub.f32 1.0, %v894_v47  ;;  %1480 = vrcp.f32 %v2250_v56  ;;  %vm885_vm15 = vmor %vm883_vm12, %vm884_vm9  ;;  %v932_v4 = vand.u32 2147483647, %v2242_v28  ;;  %v934_v22 = vand.u32 2147483648, %v2242_v28 }
 0x2ca   :  { %v911_v1 = vmul.f32 %v1473_v33, %v910_v3  ;;  %v880_v2 = vsub.f32 1.0, %v879_v55  ;;  %955 = vst.msk [vmem:[#allocation21 + $0x10] sm:$0xff] %vm328_vm1, %v877_v0  ;;  %1390 = vmatmul.msk.f32.vlgmr.msra.gmra.mxu3 %vm328_vm1, %v877_v0  ;;  %vm928_vm3 = vweird.f32 %v2242_v28  ;;  %v949_v26 = vand.u32 2147483648, %v2250_v56  ;;  %v1198_v55 = vld [vmem:[#allocation18 + $0x8] sm:$0xff] }
 0x2cb   :  { %v896_v7 = vmul.f32 %v1475_v59, %v895_v60  ;;  %v947_v29 = vand.u32 2147483647, %v2250_v56  ;;  %vm943_vm7 = vweird.f32 %v2250_v56 }
 0x2cc   :  { %v912_v37 = vadd.f32 %v1473_v33, %v911_v1  ;;  %v881_v10 = vmul.f32 %v1477_v46, %v880_v2  ;;  %v950_v30 = vor.u32 1.1754944e-38, %v949_v26 }
 0x2cd   :  { %v1479_v11 = vpop.eup %1478  ;;  %v897_v12 = vadd.f32 %v1475_v59, %v896_v7  ;;  %vm948_vm9 = vcmp.eq.f32.partialorder %v947_v29, 8.507059e+37 }
 0x2ce   :  { %v916_v14 = vsel %vm915_vm10, %v1473_v33, %v912_v37  ;;  %v882_v15 = vadd.f32 %v1477_v46, %v881_v10  ;;  %v924_v16 = vmul.f32 %v1479_v11, %v2242_v28  ;;  %vm929_vm2 = vweird.f32 %v1479_v11 }
 0x2cf   :  { %v1481_v40 = vpop.eup %1480  ;;  %v921_v43 = vsel %vm2245_vm6, %v920_v6, %v916_v14  ;;  %v901_v9 = vsel %vm900_vm13, %v1475_v59, %v897_v12  ;;  %vm930_vm5 = vmor %vm928_vm3, %vm929_vm2  ;;  %vm933_vm6 = vcmp.eq.f32.partialorder %v932_v4, 8.507059e+37  ;;  %vm1191_vm10 = vcmask 130048  }
 0x2d0   :  { %v906_v19 = vsel %vm2259_vm11, %v905_v39, %v901_v9  ;;  %v886_v20 = vsel %vm885_vm15, %v1477_v46, %v882_v15  ;;  %v925_v21 = vsub.f32 1.0, %v924_v16  ;;  %v939_v45 = vmul.f32 %v1481_v40, %v2250_v56  ;;  %v1197_v56 = vld [vmem:[#allocation18] sm:$0xff] }
 0x2d1   :  { %v891_v38 = vsel %vm888_vm14, %v890_v17, %v886_v20  ;;  %v907_v61 = vmul.f32 %v2198_v50, %v906_v19  ;;  %v922_v48 = vmul.f32 %v2196_v49, %v921_v43  ;;  %vm944_vm4 = vweird.f32 %v1481_v40  ;;  %v1488_v39 = vld [vmem:[#allocation2] sm:$0xff]  ;;  %v1489_v43 = vld [vmem:[#allocation2 + $0x8] sm:$0xff] }
 0x2d2   :  { %v926_v52 = vmul.f32 %v1479_v11, %v925_v21  ;;  %v940_v18 = vsub.f32 1.0, %v939_v45  ;;  %v892_v24 = vmul.f32 %v2204_v31, %v891_v38  ;;  %v935_v49 = vor.u32 1.1754944e-38, %v934_v22  ;;  %vm945_vm8 = vmor %vm943_vm7, %vm944_vm4 }
 0x2d3   :  { %957 = vst.msk [vmem:[#allocation21 + $0x20] sm:$0xff] %vm328_vm1, %v907_v61  ;;  %vm1194_vm11 = vcmask 195584   ;;  %v1790_v4 = vmov 32.0  }
 0x2d4   :  { %v927_v27 = vadd.f32 %v1479_v11, %v926_v52  ;;  %v941_v54 = vmul.f32 %v1481_v40, %v940_v18  ;;  %956 = vst.msk [vmem:[#allocation21 + $0x18] sm:$0xff] %vm328_vm1, %v892_v24  ;;  %1391 = vmatmul.msk.f32.vlgmr.msrb.gmra.mxu0 %vm328_vm1, %v892_v24  ;;  %1482 = vrcp.f32 %v1790_v4 }
 0x2d5   :  { %958 = vst.msk [vmem:[#allocation21 + $0x28] sm:$0xff] %vm328_vm1, %v922_v48 }
 0x2d6   :  { %v931_v50 = vsel %vm930_vm5, %v1479_v11, %v927_v27  ;;  %v942_v31 = vadd.f32 %v1481_v40, %v941_v54  ;;  %v1431_v11 = vld [vmem:[%s2342_s14] ss:$0 sm:$0xff]  ;;  %s1791_s14 = smov [#allocation21]  }
 0x2d7   :  { %v936_v25 = vsel %vm933_vm6, %v935_v49, %v931_v50  ;;  %s1318_s4 = sshll.u32 %s1791_s14, 4  ;;  %s1319_s4 = int_to_ptr.vmem [resolvable:$true] %s1318_s4 }
 0x2d8   :  { %v946_v32 = vsel %vm945_vm8, %v1481_v40, %v942_v31  ;;  %v937_v33 = vmul.f32 %v2208_v58, %v936_v25 }
 0x2d9   :  { %v951_v35 = vsel %vm948_vm9, %v950_v30, %v946_v32 }
 0x2da   :  { %959 = vst.msk [vmem:[#allocation21 + $0x30] sm:$0xff] %vm328_vm1, %v937_v33  ;;  %1394 = vmatmul.msk.f32.vlgmr.msrb.gmra.mxu3 %vm328_vm1, %v937_v33  ;;  %v952_v36 = vmul.f32 %v2212_v63, %v951_v35  ;;  %v1483_v19 = vpop.eup %1482 }
 0x2db   :  { %v1425_v59 = vpop.permute.xlu0 %1424  ;;  %v1243_v20 = vmul.f32 32.0, %v1483_v19 }
 0x2dc   :  { %v1427_v34 = vunpack.i.h.bf16 %v1425_v59  ;;  %v1426_v41 = vunpack.i.l.bf16 %v1425_v59  ;;  %960 = vst.msk [vmem:[#allocation21 + $0x38] sm:$0xff] %vm328_vm1, %v952_v36 }
 0x2dd   :  { %v1244_v21 = vsub.f32 1.0, %v1243_v20  ;;  %1326 = dma.vmem_to_hbm [thread:$0]  %s1319_s4, 1024, %s1321_s29, [#allocation22], %s1773_s22, %s1773_s22, %s1774_s2  }
 0x2de   :  { %1082 = vmatpush.msrb.mxu1 %v1426_v41  ;;  %1108 = vmatpush.msra.mxu2 %v1427_v34  ;;  %v1140_v42 = vpop.permute.xlu1 %1139 }
 0x2df   :  { %1392 = vmatmul.msk.f32.vlgmr.msrb.gmra.mxu1 %vm328_vm1, %v907_v61  ;;  %1393 = vmatmul.msk.f32.vlgmr.msra.gmra.mxu2 %vm328_vm1, %v922_v48  ;;  %v1245_v45 = vmul.f32 %v1483_v19, %v1244_v21 }
 0x2e0   :  { %1160 = vmatpush.msra.mxu0 %v1140_v42  ;;  %1223 = vmatpush.msra.mxu1 %v1200_v51 }
 0x2e1   :  { %1395 = vmatmul.msk.f32.vlgmr.msra.gmra.mxu0 %vm328_vm1, %v952_v36  ;;  %v1246_v38 = vadd.f32 %v1483_v19, %v1245_v45 }
 0x2e2   :  { %1224 = vmatpush.msra.mxu1 %v1199_v53 }
 0x2e4   :  { %1225 = vmatpush.msra.mxu1 %v1198_v55 }
 0x2e6   :  { %1226 = vmatpush.msra.mxu1 %v1197_v56 }
 0x2e7   :  { %v1004_v44 = vpop.f32.mrf.mxu2 }
 0x310   :  { %v981_v28 = vpop.f32.mrf.mxu1 }
 0x34d   :  { %v1031_v58 = vpop.f32.mrf.mxu3 }
 0x34e   :  { %1167 = vrot.lane.b32.xlu0 %v1031_v58, %s1774_s2 }
 0x351   :  { %v1058_v63 = vpop.f32.mrf.mxu0 }
 0x356   :  { %1169 = vrot.lane.b32.xlu0 %v1058_v63, %s1774_s2  ;;  %v1432_v63 = vld [vmem:[%s2343_s15] ss:$0 sm:$0xff]  ;;  %s1792_s15 = smov [#allocation20]  }
 0x357   :  { %s1305_s12 = sshll.u32 %s1792_s15, 4  ;;  %s1306_s12 = int_to_ptr.vmem [resolvable:$true] %s1305_s12 }
 0x35c   :  { %v1084_v46 = vpop.f32.mrf.mxu1 }
 0x35d   :  { %v1136_v23 = vpop.f32.mrf.mxu3  ;;  %1175 = vrot.lane.b32.xlu2 %v1084_v46, %s1788_s19 }
 0x35e   :  { %1183 = vrot.lane.b32.xlu1 %v1136_v23, %s1789_s5  ;;  %v1162_v3 = vpop.f32.mrf.mxu0 }
 0x362   :  { %v1110_v47 = vpop.f32.mrf.mxu2 }
 0x365   :  { %1177 = vrot.lane.b32.xlu2 %v1110_v47, %s1788_s19  ;;  %v1433_v47 = vld [vmem:[%s2344_s16] ss:$0 sm:$0xff] }
 0x366   :  { %1185 = vrot.lane.b32.xlu1 %v1162_v3, %s1789_s5 }
 0x3b7   :  { %v1176_v60 = vpop.permute.xlu2 %1175 }
 0x3bf   :  { %v1178_v8 = vpop.permute.xlu2 %1177 }
 0x3c0   :  { %v1168_v57 = vpop.permute.xlu0 %1167 }
 0x3c1   :  { %v1189_v62 = vsel %vm328_vm1, %v981_v28, %v1168_v57 }
 0x3c2   :  { %v1192_v2 = vsel %vm1191_vm10, %v1189_v62, %v1176_v60 }
 0x3c8   :  { %v1170_v6 = vpop.permute.xlu0 %1169 }
 0x3c9   :  { %v1190_v7 = vsel %vm328_vm1, %v1004_v44, %v1170_v6  ;;  %vm1247_vm1 = vweird.f32 %v1483_v19 }
 0x3ca   :  { %v1193_v10 = vsel %vm1191_vm10, %v1190_v7, %v1178_v8  ;;  %v1248_v22 = vsel %vm1247_vm1, %v1483_v19, %v1246_v38 }
 0x3d0   :  { %v1184_v1 = vpop.permute.xlu1 %1183 }
 0x3d1   :  { %v1195_v5 = vsel %vm1194_vm11, %v1192_v2, %v1184_v1 }
 0x3d2   :  { %1396 = vmatmul.msk.f32.vlgmr.msra.gmra.mxu1 %vm224_vm0, %v1195_v5 }
 0x3d8   :  { %v1186_v37 = vpop.permute.xlu1 %1185 }
 0x3d9   :  { %v1196_v0 = vsel %vm1194_vm11, %v1193_v10, %v1186_v37 }
 0x3da   :  { %1397 = vmatmul.msk.f32.gmra.mxu1 %vm224_vm0, %v1196_v0 }
 0x44f   :  { %v1228_v12 = vpop.f32.mrf.mxu1 }
 0x450   :  { %v1229_v13 = vadd.f32 %v1431_v11, %v1228_v12 }
 0x452   :  { %v1234_v14 = vadd.f32 %v1488_v39, %v1229_v13 }
 0x454   :  { %v1236_v15 = vsel %vm224_vm0, %v1234_v14, 0.0 }
 0x455   :  { %1237 = vadd.xlane.f32.xlu0 %v1236_v15 }
 0x457   :  { %v1231_v16 = vpop.f32.mrf.mxu1 }
 0x458   :  { %v1232_v40 = vadd.f32 %v1431_v11, %v1231_v16 }
 0x45a   :  { %v1235_v9 = vadd.f32 %v1489_v43, %v1232_v40 }
 0x45c   :  { %v1239_v17 = vsel %vm224_vm0, %v1235_v9, 0.0 }
 0x45d   :  { %1240 = vadd.xlane.f32.xlu2 %v1239_v17 }
 0x4c8   :  { %v1238_v61 = vpop.xlane.xlu0 %1237 }
 0x4c9   :  { %v1249_v48 = vmul.f32 %v1248_v22, %v1238_v61 }
 0x4cb   :  { %v1251_v52 = vsub.f32 %v1234_v14, %v1249_v48 }
 0x4cd   :  { %v1253_v18 = vmul.f32 %v1251_v52, %v1251_v52 }
 0x4cf   :  { %v1255_v24 = vsel %vm224_vm0, %v1253_v18, 0.0 }
 0x4d0   :  { %1256 = vadd.xlane.f32.xlu1 %v1255_v24  ;;  %v1241_v26 = vpop.xlane.xlu2 %1240 }
 0x4d1   :  { %v1250_v27 = vmul.f32 %v1248_v22, %v1241_v26 }
 0x4d3   :  { %v1252_v54 = vsub.f32 %v1235_v9, %v1250_v27 }
 0x4d5   :  { %v1254_v29 = vmul.f32 %v1252_v54, %v1252_v54 }
 0x4d7   :  { %v1258_v49 = vsel %vm224_vm0, %v1254_v29, 0.0 }
 0x4d8   :  { %1259 = vadd.xlane.f32.xlu0 %v1258_v49 }
 0x543   :  { %v1257_v50 = vpop.xlane.xlu1 %1256 }
 0x544   :  { %v1261_v31 = vmul.f32 %v1257_v50, %v1248_v22 }
 0x546   :  { %v1263_v25 = vadd.f32 1e-05, %v1261_v31 }
 0x548   :  { %1484 = vrsqrt.f32 %v1263_v25  ;;  %vm1271_vm13 = vweird.f32 %v1263_v25 }
 0x54b   :  { %v1260_v30 = vpop.xlane.xlu0 %1259 }
 0x54c   :  { %v1262_v32 = vmul.f32 %v1260_v30, %v1248_v22 }
 0x54e   :  { %v1485_v33 = vpop.eup %1484  ;;  %v1264_v35 = vadd.f32 1e-05, %v1262_v32 }
 0x54f   :  { %v1266_v36 = vmul.f32 %v1485_v33, %v1263_v25  ;;  %vm1272_vm12 = vweird.f32 %v1485_v33 }
 0x550   :  { %1486 = vrsqrt.f32 %v1264_v35  ;;  %vm1273_vm14 = vmor %vm1271_vm13, %vm1272_vm12  ;;  %vm1281_vm2 = vweird.f32 %v1264_v35 }
 0x551   :  { %v1267_v59 = vmul.f32 %v1485_v33, %v1266_v36 }
 0x553   :  { %v1268_v34 = vmul.f32 0.5, %v1267_v59 }
 0x555   :  { %v1269_v41 = vsub.f32 1.5, %v1268_v34 }
 0x556   :  { %v1487_v42 = vpop.eup %1486 }
 0x557   :  { %v1270_v58 = vmul.f32 %v1485_v33, %v1269_v41  ;;  %v1276_v28 = vmul.f32 %v1487_v42, %v1264_v35  ;;  %vm1282_vm15 = vweird.f32 %v1487_v42 }
 0x558   :  { %vm1283_vm3 = vmor %vm1281_vm2, %vm1282_vm15 }
 0x559   :  { %v1274_v44 = vsel %vm1273_vm14, %v1485_v33, %v1270_v58  ;;  %v1277_v46 = vmul.f32 %v1487_v42, %v1276_v28 }
 0x55a   :  { %v1285_v23 = vmul.f32 %v1274_v44, %v1251_v52 }
 0x55b   :  { %v1278_v3 = vmul.f32 0.5, %v1277_v46 }
 0x55c   :  { %v1291_v51 = vmul.f32 %v1432_v63, %v1285_v23 }
 0x55d   :  { %v1279_v53 = vsub.f32 1.5, %v1278_v3 }
 0x55e   :  { %v1297_v55 = vadd.f32 %v1433_v47, %v1291_v51 }
 0x55f   :  { %v1280_v56 = vmul.f32 %v1487_v42, %v1279_v53 }
 0x560   :  { %1299 = vst.msk [vmem:[#allocation20] sm:$0xff] %vm224_vm0, %v1297_v55 }
 0x561   :  { %v1284_v57 = vsel %vm1283_vm3, %v1487_v42, %v1280_v56 }
 0x562   :  { %v1286_v60 = vmul.f32 %v1284_v57, %v1252_v54 }
 0x564   :  { %v1292_v62 = vmul.f32 %v1432_v63, %v1286_v60 }
 0x566   :  { %v1298_v1 = vadd.f32 %v1433_v47, %v1292_v62 }
 0x568   :  { %1300 = vst.msk [vmem:[#allocation20 + $0x8] sm:$0xff] %vm224_vm0, %v1298_v1 }
 0x569   :  { %1313 = dma.vmem_to_hbm [thread:$0]  %s1306_s12, 256, %s1308_s30, [#allocation4], %s1773_s22, %s1773_s22, %s1774_s2  }
 0x56a   :  { %1768 = dma.done.wait [#allocation4], 256  }
 0x56b   :  { %1769 = vsyncadd [#allocation4], 4294967040 }
 0x56c   :  { %1770 = dma.done.wait [#allocation22], 1024  }
 0x56d   :  { %1771 = vsyncadd [#allocation22], 4294966272 }
 0x56e   :  { %1335 = vsyncpa [#allocation3], 1 }
 0x56f   :  { %1336 = vsyncpa [#allocation7], 1 }
 0x570   :  { %1337 = vsyncpa [#allocation10], 1 }
 0x571   :  { %1338 = vsyncpa [#allocation13], 1 }
 0x572   :  { %1339 = vsyncpa [#allocation19], 1 }
 0x573   :  { %1340 = vsyncpa [#allocation4], 1 }
 0x574   :  { %1341 = vsyncpa [#allocation22], 1 }
 0x575   :  { %1342 = vsyncpa [#allocation5], 1 }
 0x576   :  { %1343 = vsyncpa [#allocation17], 1 }

</bundles_post_ra>
